<compile_context>
chip_gen: v7x
topology: tpu7x:2x2x1
jax: 0.10.0
libtpu: 0.0.40
codegen_flags: <defaults>
</compile_context>

<pallas_src>
import math

import jax
import jax.numpy as jnp
from jax.experimental import pallas as pl
from jax.experimental.pallas import tpu as pltpu


# -----------------------------------------------------------------------------
# Pallas kernel: New_Audio_Guided_Attention forward, bt_tile frames per grid step.
# -----------------------------------------------------------------------------
def _make_fusion_kernel(bt_tile):
    def kernel(aud_ref, vid_ref, wa1, ba1, wv1, bv1, wbn, bbn, wvc, bvc, out_ref):
        relu = lambda x: jnp.maximum(x, 0.0)
        # Static unroll over the frames of this block (bt_tile is small, <=16).
        for f in range(bt_tile):
            a = aud_ref[f]                                   # (1, 128)      f32
            v = vid_ref[f]                                   # (rows, cols)  bf16
            # audio_query_1 = relu(affine_audio_1(audio))
            aq1 = relu(jnp.dot(a, wa1[...],
                               preferred_element_type=jnp.float32) + ba1[...])
            # video_query_1 = relu(affine_video_1(visual))   -- dominant matmul (bf16 MXU)
            vq1 = relu(jnp.dot(v, wv1[...],
                               preferred_element_type=jnp.float32) + bv1[...])
            # (audio_query_1 * video_query_1).mean(HW) == aq1 * mean(vq1, HW)
            m = jnp.mean(vq1, axis=0, keepdims=True)         # (1, cols)
            # relu(affine_bottleneck(.))
            avq = relu(jnp.dot(aq1 * m, wbn[...],
                               preferred_element_type=jnp.float32) + bbn[...])
            # sigmoid(affine_v_c_att(.)) + 1  -> channel attention gate
            gate = jax.nn.sigmoid(jnp.dot(avq, wvc[...],
                                          preferred_element_type=jnp.float32)
                                  + bvc[...]) + 1.0          # (1, cols)
            # NOTE: the reference's spatial-attention branch soft-maxes a size-1
            # axis (Linear(256,1) -> softmax(dim=-1)), which is identically 1, so
            # the output equals the channel-attended feature exactly.
            out_ref[f] = (vid_ref[f].astype(jnp.float32) * gate).astype(out_ref.dtype)
    return kernel


def _pick_bt_tile(BT, rows, cols):
    """Frames per grid step: big enough to amortize per-step overhead and make
    large DMA blocks, small enough that the double-buffered in+out blocks stay
    within a v7x-safe VMEM budget, and leaving >=2 grid steps so both of v7x's
    TensorCores get work (no-op on v5e/v6e)."""
    frame_bytes = 2 * rows * cols * 2                 # bf16 input block + output block
    cap = max(1, (8 << 20) // (2 * frame_bytes))      # x2 for double buffering
    want = max(1, -(-1024 // rows))                   # target >= ~1024 rows per step
    tile = max(1, min(cap, want, BT, 16))             # 16 bounds the static unroll
    if BT >= 2:
        tile = min(tile, max(1, (BT + 1) // 2))       # keep >= 2 grid steps
    return tile


def guided_attention_pallas(feat, aud_feat, p):
    """New_Audio_Guided_Attention forward.

    feat:     (B, T, H, W, C) channels-last visual features (any float dtype)
    aud_feat: (B, T, 128) audio features
    returns:  (B, T, H, W, C) bf16 audio-guided channel-attended features
    """
    B, T, H, W, C = feat.shape
    BT, HW = B * T, H * W

    # Lane-dense folding for narrow channel counts: view each frame's (HW, C)
    # slab as (HW/fold, fold*C) so every store is a full 128-lane vst.
    fold = 1
    if C < 128 and 128 % C == 0 and HW % (128 // C) == 0:
        fold = 128 // C
    rows, cols = HW // fold, fold * C

    vis = feat.reshape(BT, rows, cols).astype(jnp.bfloat16)     # free reshape
    aud = aud_feat.reshape(BT, 1, 128).astype(jnp.float32)

    wa1, ba1 = p["wa1"], p["ba1"]
    wv1, bv1 = p["wv1"], p["bv1"]
    wbn, bbn = p["wbn"], p["bbn"]
    wvc, bvc = p["wvc"], p["bvc"]
    if fold > 1:
        # Fold the weights so the kernel body is layout-agnostic:
        #   wv1 -> block-diag(fold copies)     (exact: folded rows are just
        #   wa1/wvc -> output-tiled             concatenated original rows)
        #   wbn -> input-tiled / fold           (folds the HW mean)
        wa1 = jnp.tile(wa1, (1, fold))
        ba1 = jnp.tile(ba1, (1, fold))
        wv1 = jnp.kron(jnp.eye(fold, dtype=wv1.dtype), wv1)
        bv1 = jnp.tile(bv1, (1, fold))
        wbn = jnp.tile(wbn, (fold, 1)) / float(fold)
        wvc = jnp.tile(wvc, (1, fold))
        bvc = jnp.tile(bvc, (1, fold))
    wv1 = wv1.astype(jnp.bfloat16)                 # dominant MXU operand in bf16
    wa1, ba1 = wa1.astype(jnp.float32), ba1.astype(jnp.float32)
    bv1 = bv1.astype(jnp.float32)
    wbn, bbn = wbn.astype(jnp.float32), bbn.astype(jnp.float32)
    wvc, bvc = wvc.astype(jnp.float32), bvc.astype(jnp.float32)

    bt_tile = _pick_bt_tile(BT, rows, cols)
    bt_pad = -(-BT // bt_tile) * bt_tile
    if bt_pad != BT:
        # Zero-pad frames (finite through relu/sigmoid); sliced off below.
        vis = jnp.pad(vis, ((0, bt_pad - BT), (0, 0), (0, 0)))
        aud = jnp.pad(aud, ((0, bt_pad - BT), (0, 0), (0, 0)))

    weights = (wa1, ba1, wv1, bv1, wbn, bbn, wvc, bvc)

    in_specs = [
        pl.BlockSpec((bt_tile, 1, 128), lambda i: (i, 0, 0)),        # audio
        pl.BlockSpec((bt_tile, rows, cols), lambda i: (i, 0, 0)),    # video
    ]
    # Weights / biases are small: full arrays, resident across the grid.
    in_specs += [pl.BlockSpec(w.shape, lambda i: (0, 0)) for w in weights]

    out = pl.pallas_call(
        _make_fusion_kernel(bt_tile),
        out_shape=jax.ShapeDtypeStruct((bt_pad, rows, cols), jnp.bfloat16),
        grid=(bt_pad // bt_tile,),
        in_specs=in_specs,
        out_specs=pl.BlockSpec((bt_tile, rows, cols), lambda i: (i, 0, 0)),
        compiler_params=pltpu.CompilerParams(
            dimension_semantics=("parallel",),
            vmem_limit_bytes=32 * 1024 * 1024,
        ),
    )(aud, vis, *weights)

    if bt_pad != BT:
        out = out[:BT]
    return out.reshape(B, T, H, W, C)                # free reshape back


# -----------------------------------------------------------------------------
# Pure-JAX f32 reference of New_Audio_Guided_Attention.forward (including the
# provably no-op spatial branch) — used to validate the Pallas kernel.
# -----------------------------------------------------------------------------
def _guided_attention_ref(feat, aud, p):
    B, T, H, W, C = feat.shape
    v = feat.reshape(B * T, H * W, C)
    a = aud.reshape(B * T, 128)
    relu = lambda x: jnp.maximum(x, 0.0)
    aq1 = relu(a @ p["wa1"] + p["ba1"])[:, None, :]
    vq1 = relu(v @ p["wv1"] + p["bv1"])
    avq = relu((aq1 * vq1).mean(axis=1) @ p["wbn"] + p["bbn"])
    c_att = jax.nn.sigmoid(avq @ p["wvc"] + p["bvc"])[:, None, :]
    c_feat = v * (c_att + 1.0)
    aq2 = relu(a @ p["wa2"] + p["ba2"])[:, None, :]
    cvq = relu(c_feat @ p["wv2"] + p["bv2"])
    s = jnp.tanh((cvq * aq2) @ p["wvs"] + p["bvs"])          # (BT, HW, 1)
    sp = jax.nn.softmax(s, axis=-1)                          # size-1 axis -> exactly 1
    return (c_feat * sp).reshape(B, T, H, W, C)


# -----------------------------------------------------------------------------
# Deterministic parameter construction (PyTorch nn.Linear-style uniform init).
# -----------------------------------------------------------------------------
def _linear(key, fan_in, fan_out):
    kw, kb = jax.random.split(key)
    bound = 1.0 / math.sqrt(fan_in)
    Wm = jax.random.uniform(kw, (fan_in, fan_out), jnp.float32, -bound, bound)
    b = jax.random.uniform(kb, (1, fan_out), jnp.float32, -bound, bound)
    return Wm, b


def make_fusion_params(key, v_dim):
    ks = jax.random.split(key, 7)
    wa1, ba1 = _linear(ks[0], 128, v_dim)      # affine_audio_1
    wv1, bv1 = _linear(ks[1], v_dim, v_dim)    # affine_video_1
    wbn, bbn = _linear(ks[2], v_dim, 256)      # affine_bottleneck
    wvc, bvc = _linear(ks[3], 256, v_dim)      # affine_v_c_att
    wa2, ba2 = _linear(ks[4], 128, 256)        # affine_audio_2   (no-op branch)
    wv2, bv2 = _linear(ks[5], v_dim, 256)      # affine_video_2   (no-op branch)
    wvs, bvs = _linear(ks[6], 256, 1)          # affine_v_s_att   (no-op branch)
    # affine_bottleneck_1/2 and affine_video_guided_1/2 are unused in forward().
    return dict(wa1=wa1, ba1=ba1, wv1=wv1, bv1=bv1, wbn=wbn, bbn=bbn,
                wvc=wvc, bvc=bvc, wa2=wa2, ba2=ba2, wv2=wv2, bv2=bv2,
                wvs=wvs, bvs=bvs)


NF = [512, 512, 256, 128, 128, 64]
ENC_SPECS = [(3, 64, 2), (64, 64, 1), (64, 128, 2), (128, 256, 2), (256, 512, 2)]
DEC_SPECS = [(512, 256, True), (512, 128, True), (256, 64, True),
             (128, 64, False), (128, 64, True)]


def make_params(key, mfcc_flat_dim, n_outputs):
    keys = jax.random.split(key, 6 + 1 + len(ENC_SPECS) + len(DEC_SPECS) + 1)
    fusion = [make_fusion_params(keys[i], NF[i]) for i in range(6)]
    audio_proj = jax.random.normal(keys[6], (mfcc_flat_dim, 128), jnp.float32)
    audio_proj = audio_proj / math.sqrt(mfcc_flat_dim)
    enc = [jax.random.normal(keys[7 + i], (c_in, c_out), jnp.float32) / math.sqrt(c_in)
           for i, (c_in, c_out, _) in enumerate(ENC_SPECS)]
    base = 7 + len(ENC_SPECS)
    dec = [jax.random.normal(keys[base + i], (c_in, c_out), jnp.float32) / math.sqrt(c_in)
           for i, (c_in, c_out, _) in enumerate(DEC_SPECS)]
    dec.append(jax.random.normal(keys[-1], (64, 3 * n_outputs), jnp.float32) / 8.0)
    return dict(fusion=fusion, audio_proj=audio_proj, enc=enc, dec=dec)


# -----------------------------------------------------------------------------
# Stubs for external pretrained sub-networks (glue, plain JAX, channels-last).
# -----------------------------------------------------------------------------
def _proj_ch(x, Wm):
    # x: (B, T, H, W, C) channels-last; 1x1 channel projection.
    y = jnp.einsum("bthwc,cd->bthwd", x, Wm, preferred_element_type=jnp.float32)
    return y.astype(x.dtype)


def _avg_pool_hw(x, k):
    B, T, H, W, C = x.shape
    return x.reshape(B, T, H // k, k, W // k, k, C).mean(axis=(3, 5)).astype(x.dtype)


def _upsample2(x):
    return jnp.repeat(jnp.repeat(x, 2, axis=2), 2, axis=3)


def stub_audio_encoder(mfcc, proj):
    # TODO(synk): torchaudio VGGISH is an external pretrained model; replaced by a
    # deterministic linear projection of the flattened log-mel patch to 128-d.
    B, T, C, F_, M = mfcc.shape
    flat = mfcc.reshape(B * T, C * F_ * M)
    return (flat @ proj).reshape(B, T, 128)


def stub_video_encoder(vid_cl, enc):
    # TODO(synk): resnet_3D unet_18 is an external pretrained model; replaced by
    # deterministic avg-pool + 1x1 channel projections producing the same channel
    # pyramid (64, 64, 128, 256, 512), kept channels-last so the fusion kernel
    # needs no transposes.
    feats, cur = [], vid_cl
    for Wm, (_, _, stride) in zip(enc, ENC_SPECS):
        if stride > 1:
            cur = _avg_pool_hw(cur, stride)
        cur = jnp.maximum(_proj_ch(cur, Wm), 0)
        feats.append(cur)
    return tuple(feats)


def stub_decoder(lth, x, dec, n_outputs):
    # TODO(synk): FLAVR UNet_3D_3D decoder is an external pretrained module; replaced
    # by deterministic 1x1 channel projections + nearest upsampling that preserve
    # ASVFI's channel/spatial plumbing (channels-last).
    if lth < 5:
        _, _, up = DEC_SPECS[lth]
        y = _proj_ch(x, dec[lth])
        if up:
            y = _upsample2(y)
        return y
    y = _proj_ch(x, dec[5])                  # (B, T, H, W, 3*n_outputs)
    y = jnp.mean(y, axis=1)                  # (B, H, W, 3*n_outputs)
    return [jnp.transpose(y[..., 3 * i:3 * (i + 1)], (0, 3, 1, 2))
            for i in range(y.shape[-1] // 3)]


# -----------------------------------------------------------------------------
# ASVFI forward.
# -----------------------------------------------------------------------------
def decode(lth, prev_vid_feat, enhanced_vid_feat, dec, n_outputs):
    decoder_out = stub_decoder(lth, enhanced_vid_feat, dec, n_outputs)
    if prev_vid_feat is not None:
        return jnp.concatenate([prev_vid_feat, decoder_out], axis=-1)
    return decoder_out


def asvfi_forward(vid, mfcc, params, n_outputs):
    mean_ = jnp.mean(vid, axis=(2, 3, 4), keepdims=True)         # (B, 3, 1, 1, 1)
    vid = vid - mean_

    aud_feat = stub_audio_encoder(mfcc, params["audio_proj"])    # (B, T, 128) f32
    # Single layout change: NCTHW -> channels-last bf16 for the whole pyramid.
    vid_cl = jnp.transpose(vid, (0, 2, 3, 4, 1)).astype(jnp.bfloat16)
    video_feats = stub_video_encoder(vid_cl, params["enc"])      # x_1 .. x_5

    vid_feat = video_feats[-1]
    for lth in range(4):
        enhanced = guided_attention_pallas(vid_feat, aud_feat, params["fusion"][lth])
        prev = video_feats[-2 - lth]
        vid_feat = decode(lth, prev, enhanced, params["dec"], n_outputs)

    enhanced = guided_attention_pallas(vid_feat, aud_feat, params["fusion"][4])
    vid_feat = decode(4, None, enhanced, params["dec"], n_outputs)
    enhanced = guided_attention_pallas(vid_feat, aud_feat, params["fusion"][5])
    out = decode(5, None, enhanced, params["dec"], n_outputs)    # list of frames

    mean_sq = jnp.squeeze(mean_, axis=2)                         # (B, 3, 1, 1)
    return [o.astype(jnp.float32) + mean_sq for o in out]


if __name__ == "__main__":
    B, T, H, W = 2, 4, 32, 32
    N_FRAMES, N_MELS = 8, 16        # small stand-in for VGGish's (96, 64) log-mel patch
    N_OUTPUTS = 2

    key = jax.random.PRNGKey(0)
    k_vid, k_mfcc, k_par, k_chk = jax.random.split(key, 4)
    vid = jax.random.normal(k_vid, (B, 3, T, H, W), jnp.float32)
    mfcc = jax.random.normal(k_mfcc, (B, T, 1, N_FRAMES, N_MELS), jnp.float32)
    params = make_params(k_par, 1 * N_FRAMES * N_MELS, N_OUTPUTS)

    # Correctness: Pallas fused attention vs. pure-JAX reference (which includes
    # the reference's size-1 softmax branch), at a folded (C=64) and an unfolded
    # (C=256) channel count.
    for v_dim, (h, w) in [(64, (8, 8)), (256, (4, 4))]:
        kf = jax.random.fold_in(k_chk, v_dim)
        fp = make_fusion_params(kf, v_dim)
        feat = jax.random.normal(jax.random.fold_in(kf, 1), (B, T, h, w, v_dim),
                                 jnp.float32).astype(jnp.bfloat16)
        auda = jax.random.normal(jax.random.fold_in(kf, 2), (B, T, 128), jnp.float32)
        got = guided_attention_pallas(feat, auda, fp).astype(jnp.float32)
        want = _guided_attention_ref(feat.astype(jnp.float32), auda, fp)
        err = float(jnp.max(jnp.abs(got - want)))
        tol = 0.05 * (float(jnp.max(jnp.abs(want))) + 1.0)
        assert err <= tol, (v_dim, err, tol)

    fwd = jax.jit(asvfi_forward, static_argnames=("n_outputs",))
    out = fwd(vid, mfcc, params, n_outputs=N_OUTPUTS)
    out = jax.block_until_ready(out)
    for o in out:
        assert o.shape == (B, 3, H, W), o.shape
        assert bool(jnp.all(jnp.isfinite(o)))
    print("KERNEL_OK")
</pallas_src>

<mosaic_0001>
module attributes {stable_mosaic.version = 11 : i64} {
  func.func @kernel(%arg0: i32, %arg1: memref<4x1x128xf32, #tpu.memory_space<vmem>>, %arg2: memref<4x32x128xbf16, #tpu.memory_space<vmem>>, %arg3: memref<128x128xf32, #tpu.memory_space<vmem>>, %arg4: memref<1x128xf32, #tpu.memory_space<vmem>>, %arg5: memref<128x128xbf16, #tpu.memory_space<vmem>>, %arg6: memref<1x128xf32, #tpu.memory_space<vmem>>, %arg7: memref<128x256xf32, #tpu.memory_space<vmem>>, %arg8: memref<1x256xf32, #tpu.memory_space<vmem>>, %arg9: memref<256x128xf32, #tpu.memory_space<vmem>>, %arg10: memref<1x128xf32, #tpu.memory_space<vmem>>, %arg11: memref<4x32x128xbf16, #tpu.memory_space<vmem>>) attributes {dimension_semantics = [#tpu.dimension_semantics<parallel>], iteration_bounds = array<i64: 2>, scalar_prefetch = 0 : i64, scratch_operands = 0 : i64, tpu.core_type = #tpu.core_type<tc>, window_params = [{transform_indices = @transform_0, window_bounds = array<i64: 4, 1, 128>}, {transform_indices = @transform_1, window_bounds = array<i64: 4, 32, 128>}, {pipeline_mode = #tpu.pipeline_mode<synchronous>, transform_indices = @transform_2, window_bounds = array<i64: 128, 128>}, {pipeline_mode = #tpu.pipeline_mode<synchronous>, transform_indices = @transform_3, window_bounds = array<i64: 1, 128>}, {pipeline_mode = #tpu.pipeline_mode<synchronous>, transform_indices = @transform_4, window_bounds = array<i64: 128, 128>}, {pipeline_mode = #tpu.pipeline_mode<synchronous>, transform_indices = @transform_5, window_bounds = array<i64: 1, 128>}, {pipeline_mode = #tpu.pipeline_mode<synchronous>, transform_indices = @transform_6, window_bounds = array<i64: 128, 256>}, {pipeline_mode = #tpu.pipeline_mode<synchronous>, transform_indices = @transform_7, window_bounds = array<i64: 1, 256>}, {pipeline_mode = #tpu.pipeline_mode<synchronous>, transform_indices = @transform_8, window_bounds = array<i64: 256, 128>}, {pipeline_mode = #tpu.pipeline_mode<synchronous>, transform_indices = @transform_9, window_bounds = array<i64: 1, 128>}, {transform_indices = @transform_10, window_bounds = array<i64: 4, 32, 128>}]} {
    %c0 = arith.constant 0 : index
    %c0_0 = arith.constant 0 : index
    %c0_1 = arith.constant 0 : index
    %0 = vector.load %arg1[%c0, %c0_0, %c0_1] : memref<4x1x128xf32, #tpu.memory_space<vmem>>, vector<1x1x128xf32>
    %1 = vector.shape_cast %0 : vector<1x1x128xf32> to vector<1x128xf32>
    %c0_2 = arith.constant 0 : index
    %c0_3 = arith.constant 0 : index
    %c0_4 = arith.constant 0 : index
    %2 = vector.load %arg2[%c0_2, %c0_3, %c0_4] : memref<4x32x128xbf16, #tpu.memory_space<vmem>>, vector<1x32x128xbf16>
    %3 = vector.shape_cast %2 : vector<1x32x128xbf16> to vector<32x128xbf16>
    %c0_5 = arith.constant 0 : index
    %c0_6 = arith.constant 0 : index
    %4 = vector.load %arg3[%c0_5, %c0_6] : memref<128x128xf32, #tpu.memory_space<vmem>>, vector<128x128xf32>
    %cst = arith.constant dense<0.000000e+00> : vector<1x128xf32>
    %5 = tpu.matmul %1, %4, %cst {dimension_numbers = #tpu.dot_dimension_numbers<[1], [0], [0], [1], [0, 0, 1, 1], [], []>} : vector<1x128xf32>, vector<128x128xf32>, vector<1x128xf32> -> vector<1x128xf32>
    %c0_7 = arith.constant 0 : index
    %c0_8 = arith.constant 0 : index
    %6 = vector.load %arg4[%c0_7, %c0_8] : memref<1x128xf32, #tpu.memory_space<vmem>>, vector<1x128xf32>
    %7 = arith.addf %5, %6 : vector<1x128xf32>
    %cst_9 = arith.constant 0.000000e+00 : f32
    %8 = vector.broadcast %cst_9 : f32 to vector<1x128xf32>
    %9 = arith.maximumf %7, %8 : vector<1x128xf32>
    %c0_10 = arith.constant 0 : index
    %c0_11 = arith.constant 0 : index
    %10 = vector.load %arg5[%c0_10, %c0_11] : memref<128x128xbf16, #tpu.memory_space<vmem>>, vector<128x128xbf16>
    %cst_12 = arith.constant dense<0.000000e+00> : vector<32x128xf32>
    %11 = tpu.matmul %3, %10, %cst_12 {dimension_numbers = #tpu.dot_dimension_numbers<[1], [0], [0], [1], [0, 0, 1, 1], [], []>} : vector<32x128xbf16>, vector<128x128xbf16>, vector<32x128xf32> -> vector<32x128xf32>
    %c0_13 = arith.constant 0 : index
    %c0_14 = arith.constant 0 : index
    %12 = vector.load %arg6[%c0_13, %c0_14] : memref<1x128xf32, #tpu.memory_space<vmem>>, vector<1x128xf32>
    %13 = vector.broadcast %12 : vector<1x128xf32> to vector<32x128xf32>
    %14 = arith.addf %11, %13 : vector<32x128xf32>
    %cst_15 = arith.constant 0.000000e+00 : f32
    %15 = vector.broadcast %cst_15 : f32 to vector<32x128xf32>
    %16 = arith.maximumf %14, %15 : vector<32x128xf32>
    %cst_16 = arith.constant dense<0.000000e+00> : vector<128xf32>
    %17 = vector.multi_reduction <add>, %16, %cst_16 [0] : vector<32x128xf32> to vector<128xf32>
    %18 = vector.shape_cast %17 : vector<128xf32> to vector<1x128xf32>
    %cst_17 = arith.constant 3.200000e+01 : f32
    %19 = vector.broadcast %cst_17 : f32 to vector<1x128xf32>
    %20 = arith.divf %18, %19 : vector<1x128xf32>
    %21 = arith.mulf %9, %20 : vector<1x128xf32>
    %c0_18 = arith.constant 0 : index
    %c0_19 = arith.constant 0 : index
    %22 = vector.load %arg7[%c0_18, %c0_19] : memref<128x256xf32, #tpu.memory_space<vmem>>, vector<128x256xf32>
    %cst_20 = arith.constant dense<0.000000e+00> : vector<1x256xf32>
    %23 = tpu.matmul %21, %22, %cst_20 {dimension_numbers = #tpu.dot_dimension_numbers<[1], [0], [0], [1], [0, 0, 1, 1], [], []>} : vector<1x128xf32>, vector<128x256xf32>, vector<1x256xf32> -> vector<1x256xf32>
    %c0_21 = arith.constant 0 : index
    %c0_22 = arith.constant 0 : index
    %24 = vector.load %arg8[%c0_21, %c0_22] : memref<1x256xf32, #tpu.memory_space<vmem>>, vector<1x256xf32>
    %25 = arith.addf %23, %24 : vector<1x256xf32>
    %cst_23 = arith.constant 0.000000e+00 : f32
    %26 = vector.broadcast %cst_23 : f32 to vector<1x256xf32>
    %27 = arith.maximumf %25, %26 : vector<1x256xf32>
    %c0_24 = arith.constant 0 : index
    %c0_25 = arith.constant 0 : index
    %28 = vector.load %arg9[%c0_24, %c0_25] : memref<256x128xf32, #tpu.memory_space<vmem>>, vector<256x128xf32>
    %cst_26 = arith.constant dense<0.000000e+00> : vector<1x128xf32>
    %29 = tpu.matmul %27, %28, %cst_26 {dimension_numbers = #tpu.dot_dimension_numbers<[1], [0], [0], [1], [0, 0, 1, 1], [], []>} : vector<1x256xf32>, vector<256x128xf32>, vector<1x128xf32> -> vector<1x128xf32>
    %c0_27 = arith.constant 0 : index
    %c0_28 = arith.constant 0 : index
    %30 = vector.load %arg10[%c0_27, %c0_28] : memref<1x128xf32, #tpu.memory_space<vmem>>, vector<1x128xf32>
    %31 = arith.addf %29, %30 : vector<1x128xf32>
    %32 = arith.negf %31 : vector<1x128xf32>
    %33 = math.exp %32 : vector<1x128xf32>
    %cst_29 = arith.constant 1.000000e+00 : f32
    %34 = vector.broadcast %cst_29 : f32 to vector<1x128xf32>
    %35 = arith.addf %34, %33 : vector<1x128xf32>
    %36 = arith.divf %34, %35 : vector<1x128xf32>
    %cst_30 = arith.constant 1.000000e+00 : f32
    %37 = vector.broadcast %cst_30 : f32 to vector<1x128xf32>
    %38 = arith.addf %36, %37 : vector<1x128xf32>
    %c0_31 = arith.constant 0 : index
    %c0_32 = arith.constant 0 : index
    %c0_33 = arith.constant 0 : index
    %39 = vector.load %arg2[%c0_31, %c0_32, %c0_33] : memref<4x32x128xbf16, #tpu.memory_space<vmem>>, vector<1x32x128xbf16>
    %40 = vector.shape_cast %39 : vector<1x32x128xbf16> to vector<32x128xbf16>
    %41 = arith.extf %40 : vector<32x128xbf16> to vector<32x128xf32>
    %42 = vector.broadcast %38 : vector<1x128xf32> to vector<32x128xf32>
    %43 = arith.mulf %41, %42 : vector<32x128xf32>
    %44 = arith.truncf %43 : vector<32x128xf32> to vector<32x128xbf16>
    %c0_34 = arith.constant 0 : index
    %c0_35 = arith.constant 0 : index
    %c0_36 = arith.constant 0 : index
    %45 = vector.load %arg11[%c0_34, %c0_35, %c0_36] : memref<4x32x128xbf16, #tpu.memory_space<vmem>>, vector<1x32x128xbf16>
    %46 = vector.shape_cast %45 : vector<1x32x128xbf16> to vector<32x128xbf16>
    %47 = vector.shape_cast %44 : vector<32x128xbf16> to vector<1x32x128xbf16>
    tpu.vector_store %arg11[%c0_34, %c0_35, %c0_36], %47 {strides = array<i32>} : memref<4x32x128xbf16, #tpu.memory_space<vmem>>, vector<1x32x128xbf16>,
    %c1 = arith.constant 1 : index
    %c0_37 = arith.constant 0 : index
    %c0_38 = arith.constant 0 : index
    %48 = vector.load %arg1[%c1, %c0_37, %c0_38] : memref<4x1x128xf32, #tpu.memory_space<vmem>>, vector<1x1x128xf32>
    %49 = vector.shape_cast %48 : vector<1x1x128xf32> to vector<1x128xf32>
    %c1_39 = arith.constant 1 : index
    %c0_40 = arith.constant 0 : index
    %c0_41 = arith.constant 0 : index
    %50 = vector.load %arg2[%c1_39, %c0_40, %c0_41] : memref<4x32x128xbf16, #tpu.memory_space<vmem>>, vector<1x32x128xbf16>
    %51 = vector.shape_cast %50 : vector<1x32x128xbf16> to vector<32x128xbf16>
    %c0_42 = arith.constant 0 : index
    %c0_43 = arith.constant 0 : index
    %52 = vector.load %arg3[%c0_42, %c0_43] : memref<128x128xf32, #tpu.memory_space<vmem>>, vector<128x128xf32>
    %cst_44 = arith.constant dense<0.000000e+00> : vector<1x128xf32>
    %53 = tpu.matmul %49, %52, %cst_44 {dimension_numbers = #tpu.dot_dimension_numbers<[1], [0], [0], [1], [0, 0, 1, 1], [], []>} : vector<1x128xf32>, vector<128x128xf32>, vector<1x128xf32> -> vector<1x128xf32>
    %c0_45 = arith.constant 0 : index
    %c0_46 = arith.constant 0 : index
    %54 = vector.load %arg4[%c0_45, %c0_46] : memref<1x128xf32, #tpu.memory_space<vmem>>, vector<1x128xf32>
    %55 = arith.addf %53, %54 : vector<1x128xf32>
    %cst_47 = arith.constant 0.000000e+00 : f32
    %56 = vector.broadcast %cst_47 : f32 to vector<1x128xf32>
    %57 = arith.maximumf %55, %56 : vector<1x128xf32>
    %c0_48 = arith.constant 0 : index
    %c0_49 = arith.constant 0 : index
    %58 = vector.load %arg5[%c0_48, %c0_49] : memref<128x128xbf16, #tpu.memory_space<vmem>>, vector<128x128xbf16>
    %cst_50 = arith.constant dense<0.000000e+00> : vector<32x128xf32>
    %59 = tpu.matmul %51, %58, %cst_50 {dimension_numbers = #tpu.dot_dimension_numbers<[1], [0], [0], [1], [0, 0, 1, 1], [], []>} : vector<32x128xbf16>, vector<128x128xbf16>, vector<32x128xf32> -> vector<32x128xf32>
    %c0_51 = arith.constant 0 : index
    %c0_52 = arith.constant 0 : index
    %60 = vector.load %arg6[%c0_51, %c0_52] : memref<1x128xf32, #tpu.memory_space<vmem>>, vector<1x128xf32>
    %61 = vector.broadcast %60 : vector<1x128xf32> to vector<32x128xf32>
    %62 = arith.addf %59, %61 : vector<32x128xf32>
    %cst_53 = arith.constant 0.000000e+00 : f32
    %63 = vector.broadcast %cst_53 : f32 to vector<32x128xf32>
    %64 = arith.maximumf %62, %63 : vector<32x128xf32>
    %cst_54 = arith.constant dense<0.000000e+00> : vector<128xf32>
    %65 = vector.multi_reduction <add>, %64, %cst_54 [0] : vector<32x128xf32> to vector<128xf32>
    %66 = vector.shape_cast %65 : vector<128xf32> to vector<1x128xf32>
    %cst_55 = arith.constant 3.200000e+01 : f32
    %67 = vector.broadcast %cst_55 : f32 to vector<1x128xf32>
    %68 = arith.divf %66, %67 : vector<1x128xf32>
    %69 = arith.mulf %57, %68 : vector<1x128xf32>
    %c0_56 = arith.constant 0 : index
    %c0_57 = arith.constant 0 : index
    %70 = vector.load %arg7[%c0_56, %c0_57] : memref<128x256xf32, #tpu.memory_space<vmem>>, vector<128x256xf32>
    %cst_58 = arith.constant dense<0.000000e+00> : vector<1x256xf32>
    %71 = tpu.matmul %69, %70, %cst_58 {dimension_numbers = #tpu.dot_dimension_numbers<[1], [0], [0], [1], [0, 0, 1, 1], [], []>} : vector<1x128xf32>, vector<128x256xf32>, vector<1x256xf32> -> vector<1x256xf32>
    %c0_59 = arith.constant 0 : index
    %c0_60 = arith.constant 0 : index
    %72 = vector.load %arg8[%c0_59, %c0_60] : memref<1x256xf32, #tpu.memory_space<vmem>>, vector<1x256xf32>
    %73 = arith.addf %71, %72 : vector<1x256xf32>
    %cst_61 = arith.constant 0.000000e+00 : f32
    %74 = vector.broadcast %cst_61 : f32 to vector<1x256xf32>
    %75 = arith.maximumf %73, %74 : vector<1x256xf32>
    %c0_62 = arith.constant 0 : index
    %c0_63 = arith.constant 0 : index
    %76 = vector.load %arg9[%c0_62, %c0_63] : memref<256x128xf32, #tpu.memory_space<vmem>>, vector<256x128xf32>
    %cst_64 = arith.constant dense<0.000000e+00> : vector<1x128xf32>
    %77 = tpu.matmul %75, %76, %cst_64 {dimension_numbers = #tpu.dot_dimension_numbers<[1], [0], [0], [1], [0, 0, 1, 1], [], []>} : vector<1x256xf32>, vector<256x128xf32>, vector<1x128xf32> -> vector<1x128xf32>
    %c0_65 = arith.constant 0 : index
    %c0_66 = arith.constant 0 : index
    %78 = vector.load %arg10[%c0_65, %c0_66] : memref<1x128xf32, #tpu.memory_space<vmem>>, vector<1x128xf32>
    %79 = arith.addf %77, %78 : vector<1x128xf32>
    %80 = arith.negf %79 : vector<1x128xf32>
    %81 = math.exp %80 : vector<1x128xf32>
    %cst_67 = arith.constant 1.000000e+00 : f32
    %82 = vector.broadcast %cst_67 : f32 to vector<1x128xf32>
    %83 = arith.addf %82, %81 : vector<1x128xf32>
    %84 = arith.divf %82, %83 : vector<1x128xf32>
    %cst_68 = arith.constant 1.000000e+00 : f32
    %85 = vector.broadcast %cst_68 : f32 to vector<1x128xf32>
    %86 = arith.addf %84, %85 : vector<1x128xf32>
    %c1_69 = arith.constant 1 : index
    %c0_70 = arith.constant 0 : index
    %c0_71 = arith.constant 0 : index
    %87 = vector.load %arg2[%c1_69, %c0_70, %c0_71] : memref<4x32x128xbf16, #tpu.memory_space<vmem>>, vector<1x32x128xbf16>
    %88 = vector.shape_cast %87 : vector<1x32x128xbf16> to vector<32x128xbf16>
    %89 = arith.extf %88 : vector<32x128xbf16> to vector<32x128xf32>
    %90 = vector.broadcast %86 : vector<1x128xf32> to vector<32x128xf32>
    %91 = arith.mulf %89, %90 : vector<32x128xf32>
    %92 = arith.truncf %91 : vector<32x128xf32> to vector<32x128xbf16>
    %c1_72 = arith.constant 1 : index
    %c0_73 = arith.constant 0 : index
    %c0_74 = arith.constant 0 : index
    %93 = vector.load %arg11[%c1_72, %c0_73, %c0_74] : memref<4x32x128xbf16, #tpu.memory_space<vmem>>, vector<1x32x128xbf16>
    %94 = vector.shape_cast %93 : vector<1x32x128xbf16> to vector<32x128xbf16>
    %95 = vector.shape_cast %92 : vector<32x128xbf16> to vector<1x32x128xbf16>
    tpu.vector_store %arg11[%c1_72, %c0_73, %c0_74], %95 {strides = array<i32>} : memref<4x32x128xbf16, #tpu.memory_space<vmem>>, vector<1x32x128xbf16>,
    %c2 = arith.constant 2 : index
    %c0_75 = arith.constant 0 : index
    %c0_76 = arith.constant 0 : index
    %96 = vector.load %arg1[%c2, %c0_75, %c0_76] : memref<4x1x128xf32, #tpu.memory_space<vmem>>, vector<1x1x128xf32>
    %97 = vector.shape_cast %96 : vector<1x1x128xf32> to vector<1x128xf32>
    %c2_77 = arith.constant 2 : index
    %c0_78 = arith.constant 0 : index
    %c0_79 = arith.constant 0 : index
    %98 = vector.load %arg2[%c2_77, %c0_78, %c0_79] : memref<4x32x128xbf16, #tpu.memory_space<vmem>>, vector<1x32x128xbf16>
    %99 = vector.shape_cast %98 : vector<1x32x128xbf16> to vector<32x128xbf16>
    %c0_80 = arith.constant 0 : index
    %c0_81 = arith.constant 0 : index
    %100 = vector.load %arg3[%c0_80, %c0_81] : memref<128x128xf32, #tpu.memory_space<vmem>>, vector<128x128xf32>
    %cst_82 = arith.constant dense<0.000000e+00> : vector<1x128xf32>
    %101 = tpu.matmul %97, %100, %cst_82 {dimension_numbers = #tpu.dot_dimension_numbers<[1], [0], [0], [1], [0, 0, 1, 1], [], []>} : vector<1x128xf32>, vector<128x128xf32>, vector<1x128xf32> -> vector<1x128xf32>
    %c0_83 = arith.constant 0 : index
    %c0_84 = arith.constant 0 : index
    %102 = vector.load %arg4[%c0_83, %c0_84] : memref<1x128xf32, #tpu.memory_space<vmem>>, vector<1x128xf32>
    %103 = arith.addf %101, %102 : vector<1x128xf32>
    %cst_85 = arith.constant 0.000000e+00 : f32
    %104 = vector.broadcast %cst_85 : f32 to vector<1x128xf32>
    %105 = arith.maximumf %103, %104 : vector<1x128xf32>
    %c0_86 = arith.constant 0 : index
    %c0_87 = arith.constant 0 : index
    %106 = vector.load %arg5[%c0_86, %c0_87] : memref<128x128xbf16, #tpu.memory_space<vmem>>, vector<128x128xbf16>
    %cst_88 = arith.constant dense<0.000000e+00> : vector<32x128xf32>
    %107 = tpu.matmul %99, %106, %cst_88 {dimension_numbers = #tpu.dot_dimension_numbers<[1], [0], [0], [1], [0, 0, 1, 1], [], []>} : vector<32x128xbf16>, vector<128x128xbf16>, vector<32x128xf32> -> vector<32x128xf32>
    %c0_89 = arith.constant 0 : index
    %c0_90 = arith.constant 0 : index
    %108 = vector.load %arg6[%c0_89, %c0_90] : memref<1x128xf32, #tpu.memory_space<vmem>>, vector<1x128xf32>
    %109 = vector.broadcast %108 : vector<1x128xf32> to vector<32x128xf32>
    %110 = arith.addf %107, %109 : vector<32x128xf32>
    %cst_91 = arith.constant 0.000000e+00 : f32
    %111 = vector.broadcast %cst_91 : f32 to vector<32x128xf32>
    %112 = arith.maximumf %110, %111 : vector<32x128xf32>
    %cst_92 = arith.constant dense<0.000000e+00> : vector<128xf32>
    %113 = vector.multi_reduction <add>, %112, %cst_92 [0] : vector<32x128xf32> to vector<128xf32>
    %114 = vector.shape_cast %113 : vector<128xf32> to vector<1x128xf32>
    %cst_93 = arith.constant 3.200000e+01 : f32
    %115 = vector.broadcast %cst_93 : f32 to vector<1x128xf32>
    %116 = arith.divf %114, %115 : vector<1x128xf32>
    %117 = arith.mulf %105, %116 : vector<1x128xf32>
    %c0_94 = arith.constant 0 : index
    %c0_95 = arith.constant 0 : index
    %118 = vector.load %arg7[%c0_94, %c0_95] : memref<128x256xf32, #tpu.memory_space<vmem>>, vector<128x256xf32>
    %cst_96 = arith.constant dense<0.000000e+00> : vector<1x256xf32>
    %119 = tpu.matmul %117, %118, %cst_96 {dimension_numbers = #tpu.dot_dimension_numbers<[1], [0], [0], [1], [0, 0, 1, 1], [], []>} : vector<1x128xf32>, vector<128x256xf32>, vector<1x256xf32> -> vector<1x256xf32>
    %c0_97 = arith.constant 0 : index
    %c0_98 = arith.constant 0 : index
    %120 = vector.load %arg8[%c0_97, %c0_98] : memref<1x256xf32, #tpu.memory_space<vmem>>, vector<1x256xf32>
    %121 = arith.addf %119, %120 : vector<1x256xf32>
    %cst_99 = arith.constant 0.000000e+00 : f32
    %122 = vector.broadcast %cst_99 : f32 to vector<1x256xf32>
    %123 = arith.maximumf %121, %122 : vector<1x256xf32>
    %c0_100 = arith.constant 0 : index
    %c0_101 = arith.constant 0 : index
    %124 = vector.load %arg9[%c0_100, %c0_101] : memref<256x128xf32, #tpu.memory_space<vmem>>, vector<256x128xf32>
    %cst_102 = arith.constant dense<0.000000e+00> : vector<1x128xf32>
    %125 = tpu.matmul %123, %124, %cst_102 {dimension_numbers = #tpu.dot_dimension_numbers<[1], [0], [0], [1], [0, 0, 1, 1], [], []>} : vector<1x256xf32>, vector<256x128xf32>, vector<1x128xf32> -> vector<1x128xf32>
    %c0_103 = arith.constant 0 : index
    %c0_104 = arith.constant 0 : index
    %126 = vector.load %arg10[%c0_103, %c0_104] : memref<1x128xf32, #tpu.memory_space<vmem>>, vector<1x128xf32>
    %127 = arith.addf %125, %126 : vector<1x128xf32>
    %128 = arith.negf %127 : vector<1x128xf32>
    %129 = math.exp %128 : vector<1x128xf32>
    %cst_105 = arith.constant 1.000000e+00 : f32
    %130 = vector.broadcast %cst_105 : f32 to vector<1x128xf32>
    %131 = arith.addf %130, %129 : vector<1x128xf32>
    %132 = arith.divf %130, %131 : vector<1x128xf32>
    %cst_106 = arith.constant 1.000000e+00 : f32
    %133 = vector.broadcast %cst_106 : f32 to vector<1x128xf32>
    %134 = arith.addf %132, %133 : vector<1x128xf32>
    %c2_107 = arith.constant 2 : index
    %c0_108 = arith.constant 0 : index
    %c0_109 = arith.constant 0 : index
    %135 = vector.load %arg2[%c2_107, %c0_108, %c0_109] : memref<4x32x128xbf16, #tpu.memory_space<vmem>>, vector<1x32x128xbf16>
    %136 = vector.shape_cast %135 : vector<1x32x128xbf16> to vector<32x128xbf16>
    %137 = arith.extf %136 : vector<32x128xbf16> to vector<32x128xf32>
    %138 = vector.broadcast %134 : vector<1x128xf32> to vector<32x128xf32>
    %139 = arith.mulf %137, %138 : vector<32x128xf32>
    %140 = arith.truncf %139 : vector<32x128xf32> to vector<32x128xbf16>
    %c2_110 = arith.constant 2 : index
    %c0_111 = arith.constant 0 : index
    %c0_112 = arith.constant 0 : index
    %141 = vector.load %arg11[%c2_110, %c0_111, %c0_112] : memref<4x32x128xbf16, #tpu.memory_space<vmem>>, vector<1x32x128xbf16>
    %142 = vector.shape_cast %141 : vector<1x32x128xbf16> to vector<32x128xbf16>
    %143 = vector.shape_cast %140 : vector<32x128xbf16> to vector<1x32x128xbf16>
    tpu.vector_store %arg11[%c2_110, %c0_111, %c0_112], %143 {strides = array<i32>} : memref<4x32x128xbf16, #tpu.memory_space<vmem>>, vector<1x32x128xbf16>,
    %c3 = arith.constant 3 : index
    %c0_113 = arith.constant 0 : index
    %c0_114 = arith.constant 0 : index
    %144 = vector.load %arg1[%c3, %c0_113, %c0_114] : memref<4x1x128xf32, #tpu.memory_space<vmem>>, vector<1x1x128xf32>
    %145 = vector.shape_cast %144 : vector<1x1x128xf32> to vector<1x128xf32>
    %c3_115 = arith.constant 3 : index
    %c0_116 = arith.constant 0 : index
    %c0_117 = arith.constant 0 : index
    %146 = vector.load %arg2[%c3_115, %c0_116, %c0_117] : memref<4x32x128xbf16, #tpu.memory_space<vmem>>, vector<1x32x128xbf16>
    %147 = vector.shape_cast %146 : vector<1x32x128xbf16> to vector<32x128xbf16>
    %c0_118 = arith.constant 0 : index
    %c0_119 = arith.constant 0 : index
    %148 = vector.load %arg3[%c0_118, %c0_119] : memref<128x128xf32, #tpu.memory_space<vmem>>, vector<128x128xf32>
    %cst_120 = arith.constant dense<0.000000e+00> : vector<1x128xf32>
    %149 = tpu.matmul %145, %148, %cst_120 {dimension_numbers = #tpu.dot_dimension_numbers<[1], [0], [0], [1], [0, 0, 1, 1], [], []>} : vector<1x128xf32>, vector<128x128xf32>, vector<1x128xf32> -> vector<1x128xf32>
    %c0_121 = arith.constant 0 : index
    %c0_122 = arith.constant 0 : index
    %150 = vector.load %arg4[%c0_121, %c0_122] : memref<1x128xf32, #tpu.memory_space<vmem>>, vector<1x128xf32>
    %151 = arith.addf %149, %150 : vector<1x128xf32>
    %cst_123 = arith.constant 0.000000e+00 : f32
    %152 = vector.broadcast %cst_123 : f32 to vector<1x128xf32>
    %153 = arith.maximumf %151, %152 : vector<1x128xf32>
    %c0_124 = arith.constant 0 : index
    %c0_125 = arith.constant 0 : index
    %154 = vector.load %arg5[%c0_124, %c0_125] : memref<128x128xbf16, #tpu.memory_space<vmem>>, vector<128x128xbf16>
    %cst_126 = arith.constant dense<0.000000e+00> : vector<32x128xf32>
    %155 = tpu.matmul %147, %154, %cst_126 {dimension_numbers = #tpu.dot_dimension_numbers<[1], [0], [0], [1], [0, 0, 1, 1], [], []>} : vector<32x128xbf16>, vector<128x128xbf16>, vector<32x128xf32> -> vector<32x128xf32>
    %c0_127 = arith.constant 0 : index
    %c0_128 = arith.constant 0 : index
    %156 = vector.load %arg6[%c0_127, %c0_128] : memref<1x128xf32, #tpu.memory_space<vmem>>, vector<1x128xf32>
    %157 = vector.broadcast %156 : vector<1x128xf32> to vector<32x128xf32>
    %158 = arith.addf %155, %157 : vector<32x128xf32>
    %cst_129 = arith.constant 0.000000e+00 : f32
    %159 = vector.broadcast %cst_129 : f32 to vector<32x128xf32>
    %160 = arith.maximumf %158, %159 : vector<32x128xf32>
    %cst_130 = arith.constant dense<0.000000e+00> : vector<128xf32>
    %161 = vector.multi_reduction <add>, %160, %cst_130 [0] : vector<32x128xf32> to vector<128xf32>
    %162 = vector.shape_cast %161 : vector<128xf32> to vector<1x128xf32>
    %cst_131 = arith.constant 3.200000e+01 : f32
    %163 = vector.broadcast %cst_131 : f32 to vector<1x128xf32>
    %164 = arith.divf %162, %163 : vector<1x128xf32>
    %165 = arith.mulf %153, %164 : vector<1x128xf32>
    %c0_132 = arith.constant 0 : index
    %c0_133 = arith.constant 0 : index
    %166 = vector.load %arg7[%c0_132, %c0_133] : memref<128x256xf32, #tpu.memory_space<vmem>>, vector<128x256xf32>
    %cst_134 = arith.constant dense<0.000000e+00> : vector<1x256xf32>
    %167 = tpu.matmul %165, %166, %cst_134 {dimension_numbers = #tpu.dot_dimension_numbers<[1], [0], [0], [1], [0, 0, 1, 1], [], []>} : vector<1x128xf32>, vector<128x256xf32>, vector<1x256xf32> -> vector<1x256xf32>
    %c0_135 = arith.constant 0 : index
    %c0_136 = arith.constant 0 : index
    %168 = vector.load %arg8[%c0_135, %c0_136] : memref<1x256xf32, #tpu.memory_space<vmem>>, vector<1x256xf32>
    %169 = arith.addf %167, %168 : vector<1x256xf32>
    %cst_137 = arith.constant 0.000000e+00 : f32
    %170 = vector.broadcast %cst_137 : f32 to vector<1x256xf32>
    %171 = arith.maximumf %169, %170 : vector<1x256xf32>
    %c0_138 = arith.constant 0 : index
    %c0_139 = arith.constant 0 : index
    %172 = vector.load %arg9[%c0_138, %c0_139] : memref<256x128xf32, #tpu.memory_space<vmem>>, vector<256x128xf32>
    %cst_140 = arith.constant dense<0.000000e+00> : vector<1x128xf32>
    %173 = tpu.matmul %171, %172, %cst_140 {dimension_numbers = #tpu.dot_dimension_numbers<[1], [0], [0], [1], [0, 0, 1, 1], [], []>} : vector<1x256xf32>, vector<256x128xf32>, vector<1x128xf32> -> vector<1x128xf32>
    %c0_141 = arith.constant 0 : index
    %c0_142 = arith.constant 0 : index
    %174 = vector.load %arg10[%c0_141, %c0_142] : memref<1x128xf32, #tpu.memory_space<vmem>>, vector<1x128xf32>
    %175 = arith.addf %173, %174 : vector<1x128xf32>
    %176 = arith.negf %175 : vector<1x128xf32>
    %177 = math.exp %176 : vector<1x128xf32>
    %cst_143 = arith.constant 1.000000e+00 : f32
    %178 = vector.broadcast %cst_143 : f32 to vector<1x128xf32>
    %179 = arith.addf %178, %177 : vector<1x128xf32>
    %180 = arith.divf %178, %179 : vector<1x128xf32>
    %cst_144 = arith.constant 1.000000e+00 : f32
    %181 = vector.broadcast %cst_144 : f32 to vector<1x128xf32>
    %182 = arith.addf %180, %181 : vector<1x128xf32>
    %c3_145 = arith.constant 3 : index
    %c0_146 = arith.constant 0 : index
    %c0_147 = arith.constant 0 : index
    %183 = vector.load %arg2[%c3_145, %c0_146, %c0_147] : memref<4x32x128xbf16, #tpu.memory_space<vmem>>, vector<1x32x128xbf16>
    %184 = vector.shape_cast %183 : vector<1x32x128xbf16> to vector<32x128xbf16>
    %185 = arith.extf %184 : vector<32x128xbf16> to vector<32x128xf32>
    %186 = vector.broadcast %182 : vector<1x128xf32> to vector<32x128xf32>
    %187 = arith.mulf %185, %186 : vector<32x128xf32>
    %188 = arith.truncf %187 : vector<32x128xf32> to vector<32x128xbf16>
    %c3_148 = arith.constant 3 : index
    %c0_149 = arith.constant 0 : index
    %c0_150 = arith.constant 0 : index
    %189 = vector.load %arg11[%c3_148, %c0_149, %c0_150] : memref<4x32x128xbf16, #tpu.memory_space<vmem>>, vector<1x32x128xbf16>
    %190 = vector.shape_cast %189 : vector<1x32x128xbf16> to vector<32x128xbf16>
    %191 = vector.shape_cast %188 : vector<32x128xbf16> to vector<1x32x128xbf16>
    tpu.vector_store %arg11[%c3_148, %c0_149, %c0_150], %191 {strides = array<i32>} : memref<4x32x128xbf16, #tpu.memory_space<vmem>>, vector<1x32x128xbf16>,
    return
  }
  func.func @transform_0(%arg0: i32) -> (i32, i32, i32) {
    %c0_i32 = arith.constant 0 : i32
    %c0_i32_0 = arith.constant 0 : i32
    %c0_i32_1 = arith.constant 0 : i32
    return %arg0, %c0_i32, %c0_i32_0 : i32, i32, i32
  }
  func.func @transform_1(%arg0: i32) -> (i32, i32, i32) {
    %c0_i32 = arith.constant 0 : i32
    %c0_i32_0 = arith.constant 0 : i32
    %c0_i32_1 = arith.constant 0 : i32
    return %arg0, %c0_i32, %c0_i32_0 : i32, i32, i32
  }
  func.func @transform_2(%arg0: i32) -> (i32, i32) {
    %c0_i32 = arith.constant 0 : i32
    %c0_i32_0 = arith.constant 0 : i32
    %c0_i32_1 = arith.constant 0 : i32
    return %c0_i32, %c0_i32_0 : i32, i32
  }
  func.func @transform_3(%arg0: i32) -> (i32, i32) {
    %c0_i32 = arith.constant 0 : i32
    %c0_i32_0 = arith.constant 0 : i32
    %c0_i32_1 = arith.constant 0 : i32
    return %c0_i32, %c0_i32_0 : i32, i32
  }
  func.func @transform_4(%arg0: i32) -> (i32, i32) {
    %c0_i32 = arith.constant 0 : i32
    %c0_i32_0 = arith.constant 0 : i32
    %c0_i32_1 = arith.constant 0 : i32
    return %c0_i32, %c0_i32_0 : i32, i32
  }
  func.func @transform_5(%arg0: i32) -> (i32, i32) {
    %c0_i32 = arith.constant 0 : i32
    %c0_i32_0 = arith.constant 0 : i32
    %c0_i32_1 = arith.constant 0 : i32
    return %c0_i32, %c0_i32_0 : i32, i32
  }
  func.func @transform_6(%arg0: i32) -> (i32, i32) {
    %c0_i32 = arith.constant 0 : i32
    %c0_i32_0 = arith.constant 0 : i32
    %c0_i32_1 = arith.constant 0 : i32
    return %c0_i32, %c0_i32_0 : i32, i32
  }
  func.func @transform_7(%arg0: i32) -> (i32, i32) {
    %c0_i32 = arith.constant 0 : i32
    %c0_i32_0 = arith.constant 0 : i32
    %c0_i32_1 = arith.constant 0 : i32
    return %c0_i32, %c0_i32_0 : i32, i32
  }
  func.func @transform_8(%arg0: i32) -> (i32, i32) {
    %c0_i32 = arith.constant 0 : i32
    %c0_i32_0 = arith.constant 0 : i32
    %c0_i32_1 = arith.constant 0 : i32
    return %c0_i32, %c0_i32_0 : i32, i32
  }
  func.func @transform_9(%arg0: i32) -> (i32, i32) {
    %c0_i32 = arith.constant 0 : i32
    %c0_i32_0 = arith.constant 0 : i32
    %c0_i32_1 = arith.constant 0 : i32
    return %c0_i32, %c0_i32_0 : i32, i32
  }
  func.func @transform_10(%arg0: i32) -> (i32, i32, i32) {
    %c0_i32 = arith.constant 0 : i32
    %c0_i32_0 = arith.constant 0 : i32
    %c0_i32_1 = arith.constant 0 : i32
    return %arg0, %c0_i32, %c0_i32_0 : i32, i32, i32
  }
}

</mosaic_0001>

<bundles_post_ra>
// kernel: tpu_custom_call.1
= control target key start
LH: loop header
LB: loop body
LE: loop exit
PB: predicated region body
PF: predicated region fallthrough
CT: control target
= control target key end

     0   :  { %s4997_s0 = inlined_call_operand.hbm [shape: f32[8,1,128], index: 0, kind: input, shape index: {}]   ;;  %s4998_s1 = inlined_call_operand.hbm [shape: bf16[8,32,128], index: 1, kind: input, shape index: {}]   ;;  %s4999_s2 = inlined_call_operand.hbm [shape: f32[128,128], index: 2, kind: input, shape index: {}]   ;;  %s5000_s3 = inlined_call_operand.vmem [shape: f32[1,128], index: 3, kind: input, shape index: {}]   ;;  %s5001_s4 = inlined_call_operand.hbm [shape: bf16[128,128], index: 4, kind: input, shape index: {}]   ;;  %s5002_s5 = inlined_call_operand.vmem [shape: f32[1,128], index: 5, kind: input, shape index: {}]   ;;  %s5003_s6 = inlined_call_operand.hbm [shape: f32[128,256], index: 6, kind: input, shape index: {}]   ;;  %s5004_s7 = inlined_call_operand.vmem [shape: f32[1,256], index: 7, kind: input, shape index: {}]   ;;  %s5005_s8 = inlined_call_operand.hbm [shape: f32[256,128], index: 8, kind: input, shape index: {}]   ;;  %s5006_s9 = inlined_call_operand.vmem [shape: f32[1,128], index: 9, kind: input, shape index: {}]   ;;  %s5007_s10 = inlined_call_operand.hbm [shape: bf16[8,32,128], index: 10, kind: output, shape index: {}]  }
   0x1   :  { %5029 = sst [smem:[#allocation27_spill]] %s4997_s0 }
   0x2   :  { %5030 = sst [smem:[#allocation28_spill]] %s4999_s2 }
   0x3   :  { %5031 = sst [smem:[#allocation29_spill]] %s5001_s4 }
   0x4   :  { %5032 = sst [smem:[#allocation30_spill]] %s5003_s6 }
   0x5   :  { %5033 = sst [smem:[#allocation31_spill]] %s5005_s8 }
   0x6   :  { %5034 = sst [smem:[#allocation32_spill]] %s5007_s10 }
   0x7   :  { %15 = vsyncpa [#allocation3], 0 }
   0x8   :  { %17 = vsyncpa [#allocation3 + $0x1], 0 }
   0x9   :  { %18 = vsyncpa [#allocation6], 0 }
   0xa   :  { %20 = vsyncpa [#allocation6 + $0x1], 0 }
   0xb   :  { %21 = vsyncpa [#allocation9], 0 }
   0xc   :  { %22 = vsyncpa [#allocation12], 0 }
   0xd   :  { %23 = vsyncpa [#allocation4], 0 }
   0xe   :  { %25 = vsyncpa [#allocation4 + $0x1], 0  ;;  %s4141_s13 = smov 0   ;;  %s4143_s14 = smov 0  }
   0xf   :  { %s4145_s15 = smov 0   ;;  %s4147_s16 = smov 0  }
  0x10 LB: > { %5035 = sst [smem:[#allocation20_spill]] %s4053_s13  ;;  %s4162_s17 = sadd.s32 4294967295, %s4065_s16   ;;  %s4065_s16 = sphi %s4147_s16, %s5083_s16   ;;  %s4061_s15 = sphi %s4145_s15, %s5082_s15   ;;  %s4057_s14 = sphi %s4143_s14, %s5081_s14   ;;  %s4053_s13 = sphi %s4141_s13, %s5080_s13  }
  0x11   : > { %s2636_s18 = sadd.s32 4294967294, %s4065_s16   ;;  %p51_p0 = scmp.ne.s32.totalorder %s4057_s14, %s4053_s13 }
  0x12   : > { %p5008_p1 = scmp.eq.s32.totalorder %s4162_s17, 0  ;;  %p275_p3 = scmp.eq.s32.totalorder %s2636_s18, 1 }
  0x13   : > { %p2637_p5 = scmp.ge.s32.totalorder %s4065_s16, 1  ;;  %p282_p7 = scmp.lt.s32.totalorder %s4065_s16, 3 }
  0x14   : > { %p4171_p4 = por %p5008_p1, %p51_p0  ;;  %p4176_p6 = por %p275_p3, %p51_p0 }
  0x15   : > { %p4181_p8 = pnand %p2637_p5, %p282_p7  ;;  %s4067_s22 = smov [#allocation7]  }
  0x16   : > { %s5036_s19 = scalar_select %p4171_p4, 1, 0 }
  0x17   : > { %s5037_s20 = scalar_select %p4176_p6, 1, 0 }
  0x18   : > { %s5039_s21 = scalar_select %p4181_p8, 1, 0 }
  0x19   : > { %5038 = sst [smem:[#allocation21_spill]] %s5037_s20  ;;  %s294_s23 = sshll.u32 %s4067_s22, 4  ;;  %s4185_s23 = int_to_ptr.vmem [resolvable:$true] %s294_s23 }
  0x1a   : > { %p3665_p9 = pneg %p4181_p8  ;;  %s4068_s25 = smov [#allocation8]  }
  0x1b   : > { %s310_s26 = sshll.u32 %s4068_s25, 4  ;;  %s5041_s2 = sld [smem:[#allocation28_spill]]  ;;  %s4196_s26 = int_to_ptr.vmem [resolvable:$true] %s310_s26 }
  0x1c   : > { %p4192_p11 = pnand %p3665_p9, %p5008_p1 }
  0x1e   : > { %p4206_p13 = pneg %p4192_p11 }
  0x21   : > { %s3811_s29 = scalar_lea.hbm %s5041_s2, 2048 }
  0x22   : > { %p3812_p12 = scmp.ne.s32.totalorder %s5041_s2, %s3811_s29  ;;  %p3818_p5 = scmp.lt.u32.totalorder %s3811_s29, %s5041_s2 }
  0x24   : > { %p3814_p0 = pnand %p4206_p13, %p3812_p12 }
  0x26   : > { %p3815_p3 = pneg %p3814_p0 }
  0x28   : > { %p3820_p7 = pnand %p3818_p5, %p3815_p3 }
  0x2a   : > { %3823 = shalt.err (!%p3820_p7)
}
  0x2b   : > { %s3824_s25 = scalar_lea.vmem %s4185_s23, 2048  ;;  %p3832_p2 = scmp.lt.s32.totalorder %s4185_s23, %s4185_s23 }
  0x2c   : > { %p3825_p9 = scmp.ne.s32.totalorder %s4185_s23, %s3824_s25  ;;  %p3833_p6 = scmp.lt.s32.totalorder %s3824_s25, %s3824_s25 }
  0x2e   : > { %p3827_p10 = pnand %p3825_p9, %p4206_p13  ;;  %p3834_p12 = por %p3833_p6, %p3832_p2 }
  0x30   : > { %p3828_p1 = pneg %p3827_p10 }
  0x32   : > { %p3835_p0 = pnand %p3834_p12, %p3828_p1 }
  0x34   : > { %3838 = shalt.err (!%p3835_p0)
}
  0x35   : > { %s5012_s27 = smov 128   ;;  %s5013_s28 = smov 8  }
  0x36   : > { %3668 = dma.hbm_to_vmem [thread:$0]  (!%p4192_p11), %s5041_s2, 2048, %s4185_s23, [#allocation6], %s5012_s27, %s5012_s27, %s5013_s28  }
  0x37   : > { %s5043_s4 = sld [smem:[#allocation29_spill]] }
  0x3d   : > { %s3839_s22 = scalar_lea.hbm %s5043_s4, 1024 }
  0x3e   : > { %p3840_p1 = scmp.ne.s32.totalorder %s5043_s4, %s3839_s22  ;;  %p3846_p10 = scmp.lt.u32.totalorder %s3839_s22, %s5043_s4 }
  0x40   : > { %p3842_p2 = pnand %p3840_p1, %p4206_p13 }
  0x42   : > { %p3843_p6 = pneg %p3842_p2 }
  0x44   : > { %p3848_p3 = pnand %p3846_p10, %p3843_p6 }
  0x46   : > { %3851 = shalt.err (!%p3848_p3)
}
  0x47   : > { %s3852_s23 = scalar_lea.vmem %s4196_s26, 1024  ;;  %p3860_p12 = scmp.lt.s32.totalorder %s4196_s26, %s4196_s26 }
  0x48   : > { %p3853_p5 = scmp.ne.s32.totalorder %s4196_s26, %s3852_s23  ;;  %p3861_p0 = scmp.lt.s32.totalorder %s3852_s23, %s3852_s23 }
  0x4a   : > { %p3855_p7 = pnand %p3853_p5, %p4206_p13  ;;  %p3862_p1 = por %p3861_p0, %p3860_p12 }
  0x4c   : > { %p3856_p9 = pneg %p3855_p7 }
  0x4e   : > { %p3863_p2 = pnand %p3862_p1, %p3856_p9 }
  0x50   : > { %3866 = shalt.err (!%p3863_p2)
}
  0x51   : > { %s5016_s20 = smov 64   ;;  %s5017_s10 = smov 4  }
  0x52   : > { %3671 = dma.hbm_to_vmem [thread:$0]  (!%p4192_p11), %s5043_s4, 1024, %s4196_s26, [#allocation9], %s5016_s20, %s5016_s20, %s5017_s10  }
  0x53   : > { %s4073_s30 = smov [#allocation10]   ;;  %s5044_s6 = sld [smem:[#allocation30_spill]] }
  0x54   : > { %s326_s11 = sshll.u32 %s4073_s30, 4  ;;  %s327_s11 = int_to_ptr.vmem [resolvable:$true] %s326_s11 }
  0x59   : > { %s3867_s25 = scalar_lea.hbm %s5044_s6, 4096 }
  0x5a   : > { %p3868_p6 = scmp.ne.s32.totalorder %s5044_s6, %s3867_s25  ;;  %p3874_p5 = scmp.lt.u32.totalorder %s3867_s25, %s5044_s6 }
  0x5c   : > { %p3870_p10 = pnand %p3868_p6, %p4206_p13 }
  0x5e   : > { %p3871_p3 = pneg %p3870_p10 }
  0x60   : > { %p3876_p7 = pnand %p3874_p5, %p3871_p3 }
  0x62   : > { %3879 = shalt.err (!%p3876_p7)
}
  0x63   : > { %s3880_s26 = scalar_lea.vmem %s327_s11, 4096  ;;  %p3888_p1 = scmp.lt.s32.totalorder %s327_s11, %s327_s11 }
  0x64   : > { %p3881_p9 = scmp.ne.s32.totalorder %s327_s11, %s3880_s26  ;;  %p3889_p2 = scmp.lt.s32.totalorder %s3880_s26, %s3880_s26 }
  0x66   : > { %p3883_p12 = pnand %p3881_p9, %p4206_p13  ;;  %p3890_p4 = por %p3889_p2, %p3888_p1 }
  0x68   : > { %p3884_p0 = pneg %p3883_p12 }
  0x6a   : > { %p3891_p8 = pnand %p3890_p4, %p3884_p0 }
  0x6c   : > { %3894 = shalt.err (!%p3891_p8)
}
  0x6d   : > { %s4074_s27 = smov 256   ;;  %s4075_s13 = smov 16  }
  0x6e   : > { %3674 = dma.hbm_to_vmem [thread:$0]  (!%p4192_p11), %s5044_s6, 4096, %s327_s11, [#allocation9], %s4074_s27, %s4074_s27, %s4075_s13  }
  0x6f   : > { %s4076_s29 = smov [#allocation11]   ;;  %s5045_s8 = sld [smem:[#allocation31_spill]] }
  0x70   : > { %s342_s30 = sshll.u32 %s4076_s29, 4  ;;  %s343_s30 = int_to_ptr.vmem [resolvable:$true] %s342_s30 }
  0x75   : > { %s3895_s25 = scalar_lea.hbm %s5045_s8, 4096 }
  0x76   : > { %p3896_p4 = scmp.ne.s32.totalorder %s5045_s8, %s3895_s25  ;;  %p3902_p10 = scmp.lt.u32.totalorder %s3895_s25, %s5045_s8 }
  0x78   : > { %p3898_p8 = pnand %p3896_p4, %p4206_p13 }
  0x7a   : > { %p3899_p6 = pneg %p3898_p8 }
  0x7c   : > { %p3904_p3 = pnand %p3902_p10, %p3899_p6 }
  0x7e   : > { %3907 = shalt.err (!%p3904_p3)
}
  0x7f   : > { %s3908_s11 = scalar_lea.vmem %s343_s30, 4096  ;;  %p3916_p12 = scmp.lt.s32.totalorder %s343_s30, %s343_s30 }
  0x80   : > { %p3909_p5 = scmp.ne.s32.totalorder %s343_s30, %s3908_s11  ;;  %p3917_p0 = scmp.lt.s32.totalorder %s3908_s11, %s3908_s11 }
  0x82   : > { %p3911_p7 = pnand %p3909_p5, %p4206_p13  ;;  %p3918_p1 = por %p3917_p0, %p3916_p12 }
  0x84   : > { %p3912_p9 = pneg %p3911_p7 }
  0x86   : > { %p3919_p2 = pnand %p3918_p1, %p3912_p9 }
  0x88   : > { %3922 = shalt.err (!%p3919_p2)
}
  0x89   : > { %s5046_s27 = smov 8   ;;  %s5047_s2 = smov 128  }
  0x8a   : > { %3677 = dma.hbm_to_vmem [thread:$0]  (!%p4192_p11), %s5045_s8, 4096, %s343_s30, [#allocation12], %s5047_s2, %s5047_s2, %s5046_s27  }
  0x8b   : > { %s4297_s12 = sadd.s32 1, %s4065_s16   ;;  %s38_s24 = sadd.s32 1, %s4061_s15 }
  0x8c   : > { %s35_s28 = ssub.s32 %s4065_s16, %s4297_s12  ;;  %p45_p13 = scmp.ne.s32.totalorder %s4061_s15, %s4057_s14 }
  0x8d   : > { %p36_p4 = scmp.eq.s32.totalorder %s35_s28, 0  ;;  %p46_p8 = scmp.eq.s32.totalorder %s4065_s16, 0 }
  0x8e   : > { %p5048_p6 = scmp.eq.s32.totalorder %s4162_s17, 1  ;;  %p3693_p3 = scmp.lt.s32.totalorder %s4065_s16, 2 }
  0x8f   : > { %s4313_s18 = scalar_select %p36_p4, %s4061_s15, %s38_s24  }
  0x90   : > { %p4307_p10 = por %p5048_p6, %p45_p13  ;;  %p47_p5 = por %p46_p8, %p45_p13 }
  0x91   : > { %s4316_s22 = sand.u32 1, %s4061_s15   ;;  %s2755_s25 = sshll.u32 %s4065_s16, 6 }
  0x92   : > { %s2643_s30 = sshll.u32 %s4316_s22, 2  ;;  %s5050_s0 = sld [smem:[#allocation27_spill]] }
  0x93   : > { %s363_s27 = scalar_lea.vmem [#allocation2], %s2643_s30  ;;  %p4327_p11 = pnand %p3693_p3, %p47_p5 }
  0x94   : > { %s370_s2 = sshll.u32 %s363_s27, 4  ;;  %s360_s24 = scalar_lea.sflag [#allocation3], %s4316_s22  ;;  %s4325_s2 = int_to_ptr.vmem [resolvable:$true] %s370_s2 }
  0x95   : > { %p3925_p9 = pneg %p4327_p11 }
  0x98   : > { %s4323_s11 = scalar_lea.hbm %s5050_s0, %s2755_s25  ;;  %s3928_s23 = scalar_lea.hbm %s5050_s0, 128 }
  0x99   : > { %s3923_s28 = scalar_lea.hbm %s4323_s11, 64  ;;  %p3929_p1 = scmp.lt.u32.totalorder %s4323_s11, %s5050_s0 }
  0x9a   : > { %p3924_p7 = scmp.ne.s32.totalorder %s4323_s11, %s3923_s28  ;;  %p3930_p2 = scmp.lt.u32.totalorder %s3928_s23, %s3923_s28 }
  0x9b   : > { %p3932_p4 = scmp.lt.u32.totalorder %s3923_s28, %s4323_s11 }
  0x9c   : > { %p3926_p12 = pnand %p3925_p9, %p3924_p7  ;;  %p3931_p13 = por %p3930_p2, %p3929_p1 }
  0x9e   : > { %p3927_p0 = pneg %p3926_p12  ;;  %p3933_p8 = por %p3932_p4, %p3931_p13 }
  0xa0   : > { %p3934_p6 = pnand %p3933_p8, %p3927_p0 }
  0xa2   : > { %3937 = shalt.err (!%p3934_p6)
}
  0xa3   : > { %s3938_s10 = scalar_lea.vmem %s4325_s2, 64  ;;  %s4077_s30 = smov [#allocation2]  }
  0xa4   : > { %p3939_p3 = scmp.ne.s32.totalorder %s4325_s2, %s3938_s10  ;;  %s3943_s25 = sshll.u32 %s4077_s30, 4  ;;  %s3944_s25 = int_to_ptr.vmem [resolvable:$false] %s3943_s25 }
  0xa5   : > { %s3945_s26 = scalar_lea.vmem %s3944_s25, 128  ;;  %p3946_p12 = scmp.lt.s32.totalorder %s4325_s2, %s3944_s25 }
  0xa6   : > { %p3941_p5 = pnand %p3939_p3, %p3925_p9  ;;  %p3947_p1 = scmp.lt.s32.totalorder %s3945_s26, %s3938_s10 }
  0xa8   : > { %p3942_p7 = pneg %p3941_p5  ;;  %p3948_p2 = por %p3947_p1, %p3946_p12 }
  0xaa   : > { %p3949_p13 = pnand %p3948_p2, %p3942_p7 }
  0xac   : > { %3952 = shalt.err (!%p3949_p13)
}
  0xad   : > { %s4078_s28 = smov 1   ;;  %s2646_s23 = sshll.u32 %s4316_s22, 6 }
  0xae   : > { %3681 = dma.hbm_to_vmem [thread:$0]  (!%p4327_p11), %s4323_s11, 64, %s4325_s2, %s360_s24, %s4075_s13, %s4075_s13, %s4078_s28  }
  0xaf   : > { %s2757_s27 = sshll.u32 %s4065_s16, 10  ;;  %s384_s26 = scalar_lea.vmem [#allocation5], %s2646_s23 }
  0xb0   : > { %s4367_s25 = scalar_lea.hbm %s4998_s1, %s2757_s27  ;;  %s392_s0 = sshll.u32 %s384_s26, 4  ;;  %s4369_s0 = int_to_ptr.vmem [resolvable:$true] %s392_s0 }
  0xb1   : > { %s5052_s4 = sand.u32 1, %s4065_s16   ;;  %s3953_s8 = scalar_lea.hbm %s4367_s25, 1024 }
  0xb2   : > { %s4373_s6 = scalar_lea.sflag [#allocation6], %s5052_s4  ;;  %p3954_p0 = scmp.ne.s32.totalorder %s4367_s25, %s3953_s8 }
  0xb3   : > { %s3958_s11 = scalar_lea.hbm %s4998_s1, 2048  ;;  %p3959_p6 = scmp.lt.u32.totalorder %s4367_s25, %s4998_s1 }
  0xb4   : > { %p3956_p4 = pnand %p3954_p0, %p3925_p9  ;;  %p3960_p3 = scmp.lt.u32.totalorder %s3958_s11, %s3953_s8 }
  0xb5   : > { %p3962_p7 = scmp.lt.u32.totalorder %s3953_s8, %s4367_s25 }
  0xb6   : > { %p3957_p8 = pneg %p3956_p4  ;;  %p3961_p5 = por %p3960_p3, %p3959_p6 }
  0xb8   : > { %p3963_p12 = por %p3962_p7, %p3961_p5 }
  0xba   : > { %p3964_p1 = pnand %p3963_p12, %p3957_p8 }
  0xbc   : > { %3967 = shalt.err (!%p3964_p1)
}
  0xbd   : > { %s3968_s4 = scalar_lea.vmem %s4369_s0, 1024  ;;  %s4079_s28 = smov [#allocation5]  }
  0xbe   : > { %p3969_p2 = scmp.ne.s32.totalorder %s4369_s0, %s3968_s4  ;;  %s3973_s23 = sshll.u32 %s4079_s28, 4  ;;  %s3974_s23 = int_to_ptr.vmem [resolvable:$false] %s3973_s23 }
  0xbf   : > { %s3975_s27 = scalar_lea.vmem %s3974_s23, 2048  ;;  %p3976_p4 = scmp.lt.s32.totalorder %s4369_s0, %s3974_s23 }
  0xc0   : > { %p3971_p13 = pnand %p3969_p2, %p3925_p9  ;;  %p3977_p6 = scmp.lt.s32.totalorder %s3975_s27, %s3968_s4 }
  0xc2   : > { %p3972_p0 = pneg %p3971_p13  ;;  %p3978_p3 = por %p3977_p6, %p3976_p4 }
  0xc4   : > { %p3979_p5 = pnand %p3978_p3, %p3972_p0 }
  0xc6   : > { %3982 = shalt.err (!%p3979_p5)
}
  0xc7   : > { %s5053_s8 = smov 4   ;;  %s5054_s10 = smov 64  }
  0xc8   : > { %3684 = dma.hbm_to_vmem [thread:$0]  (!%p4327_p11), %s4367_s25, 1024, %s4369_s0, %s4373_s6, %s5054_s10, %s5054_s10, %s5053_s8  }
  0xc9   : > { %p5055_p9 = scmp.ne.s32.totalorder %s5039_s21, 0 }
  0xcb   : > { %404 = sbr.rel (%p5055_p9) target bundleno = 2462 (0x99e), region = 60 }
  0xd2   : > { %s4405_s30 = sand.u32 1, %s4057_s14   ;;  %p5056_p8 = scmp.ne.s32.totalorder %s5036_s19, 0 }
  0xd3   : > { %s2651_s26 = sshll.u32 %s4405_s30, 2  ;;  %s407_s13 = scalar_lea.sflag [#allocation3], %s4405_s30 }
  0xd4   : > { %s4409_s22 = scalar_lea.vmem [#allocation2], %s2651_s26 }
  0xd5   : > { %4028 = dma.done.wait (%p5056_p8), %s407_s13, 64  }
  0xd6   : > { %4030 = vsyncadd (%p5056_p8), %s407_s13, 4294967232  ;;  %s415_s0 = sand.u32 1, %s4162_s17   ;;  %s2652_s6 = sshll.u32 %s4405_s30, 6 }
  0xd7   : > { %s416_s21 = scalar_lea.sflag [#allocation6], %s415_s0  ;;  %s4419_s20 = scalar_lea.vmem [#allocation5], %s2652_s6 }
  0xd8   : > { %4032 = dma.done.wait (%p5056_p8), %s416_s21, 1024  }
  0xd9   : > { %4034 = vsyncadd (%p5056_p8), %s416_s21, 4294966272  ;;  %p5057_p11 = scmp.eq.s32.totalorder %s4162_s17, 0 }
  0xdb   : > { %4036 = dma.done.wait (%p5057_p11), [#allocation6], 2048   ;;  %p5058_p7 = pmov %p5057_p11 }
  0xdd   : > { %4038 = vsyncadd (%p5058_p7), [#allocation6], 4294965248  ;;  %p5059_p12 = pmov %p5058_p7 }
  0xde   : > { %p5060_p1 = pmov %p5058_p7 }
  0xdf   : > { %4040 = dma.done.wait (%p5059_p12), [#allocation9], 5120  }
  0xe0   : > { %4042 = vsyncadd (%p5060_p1), [#allocation9], 4294962176  ;;  %p5061_p2 = pmov %p5060_p1 }
  0xe1   : > { %p5062_p13 = pmov %p5060_p1 }
  0xe2   : > { %4044 = dma.done.wait (%p5061_p2), [#allocation12], 4096  }
  0xe3   : > { %4046 = vsyncadd (%p5062_p13), [#allocation12], 4294963200  ;;  %v5018_v0 = vmov 0.0|0.0   ;;  %vm4081_vm0 = vmmov 0   ;;  %v5020_v1 = vmov 0.0   ;;  %v3747_v2 = vld [vmem:[#allocation8] sm:$0xff]  }
  0xe4   : > { %3291 = vmatprep.subr.bf16.mxu0 %v5018_v0  ;;  %3103 = vmatprep.mubr.msk.f32.mxu0 %vm4081_vm0, %v5020_v1  ;;  %v3748_v3 = vld [vmem:[#allocation8 + $0x8] sm:$0xff]   ;;  %v3749_v4 = vld [vmem:[#allocation8 + $0x10] sm:$0xff]   ;;  %v486_v5 = vld [vmem:[#allocation7] sm:$0xff]  ;;  %s4673_s27 = scalar_lea.vmem [#allocation13], %s2652_s6  ;;  %s2775_s13 = sshll.u32 %s4162_s17, 10 }
  0xe5   : > { %3106 = vmatprep.subr.bf16.mxu1 %v3747_v2  ;;  %v487_v6 = vld [vmem:[#allocation7 + $0x8] sm:$0xff]  ;;  %v3750_v7 = vld [vmem:[#allocation8 + $0x18] sm:$0xff]   ;;  %v488_v9 = vld [vmem:[#allocation7 + $0x10] sm:$0xff]  ;;  %s2502_s0 = sshll.u32 %s4673_s27, 4  ;;  %s5075_s19 = sld [smem:[#allocation32_spill]]  ;;  %s4951_s0 = int_to_ptr.vmem [resolvable:$true] %s2502_s0 }
  0xe6   : > { %3107 = vmatpush3.bf16.msra.mxu1 %v3747_v2  ;;  %v4440_v8 = vpack.c.bf16 %v487_v6, %v486_v5  ;;  %v489_v10 = vld [vmem:[#allocation7 + $0x18] sm:$0xff]  ;;  %v490_v12 = vld [vmem:[#allocation7 + $0x20] sm:$0xff]  ;;  %v491_v13 = vld [vmem:[#allocation7 + $0x28] sm:$0xff]  ;;  %s2488_s17 = scalar_lea.sflag [#allocation4], %s4405_s30  ;;  %s3983_s11 = scalar_lea.vmem %s4951_s0, 1024 }
  0xe7   : > { %3108 = vmatprep.subr.bf16.mxu1 %v3748_v3  ;;  %v4443_v11 = vpack.c.bf16 %v489_v10, %v488_v9  ;;  %v4447_v14 = vld [vmem:[%s4419_s20] sm:$0xff]   ;;  %v4450_v16 = vpack.c.bf16 %v491_v13, %v490_v12  ;;  %v492_v17 = vld [vmem:[#allocation7 + $0x30] sm:$0xff]  ;;  %v493_v18 = vld [vmem:[#allocation7 + $0x38] sm:$0xff]  ;;  %p3984_p0 = scmp.ne.s32.totalorder %s4951_s0, %s3983_s11 }
  0xe8   : > { %3293 = vmatpush3.bf16.msra.mxu0 %v4440_v8  ;;  %v3751_v15 = vld [vmem:[#allocation8 + $0x20] sm:$0xff]   ;;  %3122 = vmatprep.mubr.bf16.mxu1 %v4447_v14  ;;  %v3752_v19 = vld [vmem:[#allocation8 + $0x28] sm:$0xff]   ;;  %v4455_v22 = vpack.c.bf16 %v493_v18, %v492_v17  ;;  %v3753_v23 = vld [vmem:[#allocation8 + $0x30] sm:$0xff]  }
  0xe9   : > { %3294 = vmatprep.subr.bf16.mxu0 %v5018_v0  ;;  %v494_v20 = vld [vmem:[#allocation7 + $0x40] sm:$0xff]  ;;  %v495_v21 = vld [vmem:[#allocation7 + $0x48] sm:$0xff]  ;;  %v496_v24 = vld [vmem:[#allocation7 + $0x50] sm:$0xff]  ;;  %p3985_p4 = pnand %p3984_p0, %p4307_p10 }
  0xea   : > { %3109 = vmatpush3.bf16.msra.mxu1 %v3748_v3  ;;  %v497_v25 = vld [vmem:[#allocation7 + $0x58] sm:$0xff]  ;;  %v4459_v26 = vpack.c.bf16 %v495_v21, %v494_v20  ;;  %v498_v28 = vld [vmem:[#allocation7 + $0x60] sm:$0xff]  ;;  %v499_v29 = vld [vmem:[#allocation7 + $0x68] sm:$0xff] }
  0xeb   : > { %3110 = vmatprep.subr.bf16.mxu1 %v3749_v4  ;;  %v3754_v27 = vld [vmem:[#allocation8 + $0x38] sm:$0xff]   ;;  %v4463_v30 = vld [vmem:[%s4419_s20 + $0x8] sm:$0xff]   ;;  %v4466_v31 = vpack.c.bf16 %v497_v25, %v496_v24  ;;  %v500_v32 = vld [vmem:[#allocation7 + $0x70] sm:$0xff]  ;;  %v4470_v34 = vpack.c.bf16 %v499_v29, %v498_v28  ;;  %s4949_s25 = scalar_lea.hbm %s5075_s19, %s2775_s13  ;;  %p3986_p6 = pneg %p3985_p4 }
  0xec   : > { %3296 = vmatpush3.bf16.msra.mxu0 %v4443_v11  ;;  %v501_v33 = vld [vmem:[#allocation7 + $0x78] sm:$0xff]  ;;  %v723_v35 = vld [vmem:[#allocation10 + $0x8] sm:$0xff]  ;;  %v722_v39 = vld [vmem:[#allocation10] sm:$0xff] }
  0xed   : > { %3297 = vmatprep.subr.bf16.mxu0 %v5018_v0  ;;  %v725_v36 = vld [vmem:[#allocation10 + $0x18] sm:$0xff]  ;;  %v4474_v37 = vpack.c.bf16 %v501_v33, %v500_v32  ;;  %v724_v40 = vld [vmem:[#allocation10 + $0x10] sm:$0xff]  ;;  %v727_v43 = vld [vmem:[#allocation10 + $0x28] sm:$0xff] }
  0xee   : > { %3111 = vmatpush3.bf16.msra.mxu1 %v3749_v4  ;;  %v4478_v38 = vpack.c.bf16 %v725_v36, %v723_v35  ;;  %v481_v41 = vld [vmem:[%s4409_s22] sm:$0x1]  ;;  %v4482_v42 = vpack.c.bf16 %v724_v40, %v722_v39  ;;  %v726_v46 = vld [vmem:[#allocation10 + $0x20] sm:$0xff]  ;;  %v728_v47 = vld [vmem:[#allocation10 + $0x30] sm:$0xff] }
  0xef   : > { %3112 = vmatprep.subr.bf16.mxu1 %v3750_v7  ;;  %v729_v44 = vld [vmem:[#allocation10 + $0x38] sm:$0xff]  ;;  %v4489_v48 = vpack.c.bf16 %v728_v47, %v726_v46  ;;  %v731_v49 = vld [vmem:[#allocation10 + $0x48] sm:$0xff]  ;;  %v730_v52 = vld [vmem:[#allocation10 + $0x40] sm:$0xff] }
  0xf0   : > { %3299 = vmatpush3.bf16.msra.mxu0 %v4450_v16  ;;  %v4487_v45 = vpack.c.bf16 %v729_v44, %v727_v43  ;;  %v733_v50 = vld [vmem:[#allocation10 + $0x58] sm:$0xff]  ;;  %v732_v53 = vld [vmem:[#allocation10 + $0x50] sm:$0xff]  ;;  %v735_v55 = vld [vmem:[#allocation10 + $0x68] sm:$0xff] }
  0xf1   : > { %3300 = vmatprep.subr.bf16.mxu0 %v5018_v0  ;;  %v4493_v51 = vpack.c.bf16 %v733_v50, %v731_v49  ;;  %v4495_v54 = vpack.c.bf16 %v732_v53, %v730_v52  ;;  %v737_v56 = vld [vmem:[#allocation10 + $0x78] sm:$0xff]  ;;  %v734_v58 = vld [vmem:[#allocation10 + $0x60] sm:$0xff]  ;;  %v736_v59 = vld [vmem:[#allocation10 + $0x70] sm:$0xff] }
  0xf2   : > { %3113 = vmatpush3.bf16.msra.mxu1 %v3750_v7  ;;  %v4499_v57 = vpack.c.bf16 %v737_v56, %v735_v55  ;;  %v4501_v60 = vpack.c.bf16 %v736_v59, %v734_v58  ;;  %v739_v61 = vld [vmem:[#allocation10 + $0x88] sm:$0xff]  ;;  %v741_v62 = vld [vmem:[#allocation10 + $0x98] sm:$0xff]  ;;  %v738_v2 = vld [vmem:[#allocation10 + $0x80] sm:$0xff] }
  0xf3   : > { %3114 = vmatprep.subr.bf16.mxu1 %v3751_v15  ;;  %v4505_v63 = vpack.c.bf16 %v741_v62, %v739_v61  ;;  %v740_v3 = vld [vmem:[#allocation10 + $0x90] sm:$0xff]  ;;  %v743_v5 = vld [vmem:[#allocation10 + $0xa8] sm:$0xff]  ;;  %v745_v6 = vld [vmem:[#allocation10 + $0xb8] sm:$0xff] }
  0xf4   : > { %3302 = vmatpush3.bf16.msra.mxu0 %v4455_v22  ;;  %v4507_v4 = vpack.c.bf16 %v740_v3, %v738_v2  ;;  %v4511_v7 = vpack.c.bf16 %v745_v6, %v743_v5  ;;  %v742_v9 = vld [vmem:[#allocation10 + $0xa0] sm:$0xff]  ;;  %v744_v10 = vld [vmem:[#allocation10 + $0xb0] sm:$0xff]  ;;  %v747_v13 = vld [vmem:[#allocation10 + $0xc8] sm:$0xff] }
  0xf5   : > { %3303 = vmatprep.subr.bf16.mxu0 %v5018_v0  ;;  %v4513_v12 = vpack.c.bf16 %v744_v10, %v742_v9  ;;  %v746_v18 = vld [vmem:[#allocation10 + $0xc0] sm:$0xff]  ;;  %v751_v21 = vld [vmem:[#allocation10 + $0xe8] sm:$0xff]  ;;  %v857_v39 = vld [vmem:[#allocation11 + $0x90] sm:$0xff] }
  0xf6   : > { %3115 = vmatpush3.bf16.msra.mxu1 %v3751_v15  ;;  %v749_v15 = vld [vmem:[#allocation10 + $0xd8] sm:$0xff]  ;;  %v750_v25 = vld [vmem:[#allocation10 + $0xe0] sm:$0xff]  ;;  %v856_v32 = vld [vmem:[#allocation11 + $0x88] sm:$0xff] }
  0xf7   : > { %3116 = vmatprep.subr.bf16.mxu1 %v3752_v19  ;;  %v4517_v17 = vpack.c.bf16 %v749_v15, %v747_v13  ;;  %v855_v29 = vld [vmem:[#allocation11 + $0x80] sm:$0xff]  ;;  %v840_v36 = vld [vmem:[#allocation11 + $0x8] sm:$0xff]  ;;  %v858_v40 = vld [vmem:[#allocation11 + $0x98] sm:$0xff] }
  0xf8   : > { %3305 = vmatpush3.bf16.msra.mxu0 %v4459_v26  ;;  %v839_v33 = vld [vmem:[#allocation11] sm:$0xff]  ;;  %v4530_v35 = vpack.c.bf16 %v856_v32, %v855_v29  ;;  %v4534_v43 = vpack.c.bf16 %v858_v40, %v857_v39  ;;  %v841_v44 = vld [vmem:[#allocation11 + $0x10] sm:$0xff]  ;;  %v842_v46 = vld [vmem:[#allocation11 + $0x18] sm:$0xff] }
  0xf9   : > { %3306 = vmatprep.subr.bf16.mxu0 %v5018_v0  ;;  %v859_v47 = vld [vmem:[#allocation11 + $0xa0] sm:$0xff]  ;;  %v860_v49 = vld [vmem:[#allocation11 + $0xa8] sm:$0xff]  ;;  %v4538_v50 = vpack.c.bf16 %v842_v46, %v841_v44  ;;  %v861_v56 = vld [vmem:[#allocation11 + $0xb0] sm:$0xff] }
  0xfa   : > { %3117 = vmatpush3.bf16.msra.mxu1 %v3752_v19  ;;  %v748_v19 = vld [vmem:[#allocation10 + $0xd0] sm:$0xff]  ;;  %v4541_v52 = vpack.c.bf16 %v860_v49, %v859_v47  ;;  %v843_v53 = vld [vmem:[#allocation11 + $0x20] sm:$0xff]  ;;  %v844_v55 = vld [vmem:[#allocation11 + $0x28] sm:$0xff] }
  0xfb   : > { %3118 = vmatprep.subr.bf16.mxu1 %v3753_v23  ;;  %v4519_v20 = vpack.c.bf16 %v748_v19, %v746_v18  ;;  %v862_v58 = vld [vmem:[#allocation11 + $0xb8] sm:$0xff]  ;;  %v4544_v59 = vpack.c.bf16 %v844_v55, %v843_v53  ;;  %v845_v62 = vld [vmem:[#allocation11 + $0x30] sm:$0xff]  ;;  %v863_v3 = vld [vmem:[#allocation11 + $0xc0] sm:$0xff] }
  0xfc   : > { %3308 = vmatpush3.bf16.msra.mxu0 %v4466_v31  ;;  %v4547_v61 = vpack.c.bf16 %v862_v58, %v861_v56  ;;  %v846_v2 = vld [vmem:[#allocation11 + $0x38] sm:$0xff]  ;;  %v864_v5 = vld [vmem:[#allocation11 + $0xc8] sm:$0xff]  ;;  %v847_v10 = vld [vmem:[#allocation11 + $0x40] sm:$0xff] }
  0xfd   : > { %3309 = vmatprep.subr.bf16.mxu0 %v5018_v0  ;;  %v4550_v6 = vpack.c.bf16 %v846_v2, %v845_v62  ;;  %v4553_v9 = vpack.c.bf16 %v864_v5, %v863_v3  ;;  %v848_v13 = vld [vmem:[#allocation11 + $0x48] sm:$0xff]  ;;  %v865_v15 = vld [vmem:[#allocation11 + $0xd0] sm:$0xff]  ;;  %v866_v18 = vld [vmem:[#allocation11 + $0xd8] sm:$0xff] }
  0xfe   : > { %3119 = vmatpush3.bf16.msra.mxu1 %v3753_v23  ;;  %v753_v23 = vld [vmem:[#allocation10 + $0xf8] sm:$0xff]  ;;  %v4556_v19 = vpack.c.bf16 %v848_v13, %v847_v10  ;;  %v868_v29 = vld [vmem:[#allocation11 + $0xe8] sm:$0xff] }
  0xff   : > { %3120 = vmatprep.subr.bf16.mxu1 %v3754_v27  ;;  %v4523_v24 = vpack.c.bf16 %v753_v23, %v751_v21  ;;  %v4559_v21 = vpack.c.bf16 %v866_v18, %v865_v15  ;;  %v849_v23 = vld [vmem:[#allocation11 + $0x50] sm:$0xff]  ;;  %v852_v39 = vld [vmem:[#allocation11 + $0x68] sm:$0xff]  ;;  %v4575_v44 = vld [vmem:[%s5002_s5] ss:$0 sm:$0xff] }
 0x100   : > { %3311 = vmatpush3.bf16.msra.mxu0 %v4470_v34 }
 0x101   : > { %3312 = vmatprep.subr.bf16.mxu0 %v5018_v0 }
 0x102   : > { %3121 = vmatpush3.bf16.msra.mxu1 %v3754_v27  ;;  %v752_v27 = vld [vmem:[#allocation10 + $0xf0] sm:$0xff] }
 0x103   : > { %v4525_v28 = vpack.c.bf16 %v752_v27, %v750_v25  ;;  %3348 = vmatprep.subr.bf16.mxu1 %v4530_v35  ;;  %v850_v25 = vld [vmem:[#allocation11 + $0x58] sm:$0xff]  ;;  %v867_v27 = vld [vmem:[#allocation11 + $0xe0] sm:$0xff] }
 0x104   : > { %3314 = vmatpush3.bf16.msra.mxu0 %v4474_v37  ;;  %v4562_v32 = vpack.c.bf16 %v850_v25, %v849_v23 }
 0x105   : > { %3123 = vmatmul.mubr.bf16.vlgmr.msra.gmra.mrb[0].mxu1 %v4463_v30  ;;  %3316 = vmatprep.subr.bf16.mxu0 %v4478_v38 }
 0x107   : > { %3104 = vmatmul.mubr.f32.vlgmr.msra.gmra.mrb[0].mxu0 %v481_v41  ;;  %v4532_v41 = vpack.c.bf16 %v840_v36, %v839_v33  ;;  %v4565_v33 = vpack.c.bf16 %v868_v29, %v867_v27  ;;  %v851_v36 = vld [vmem:[#allocation11 + $0x60] sm:$0xff] }
 0x108   : > { %3318 = vmatpush1.bf16.msra.mxu0 %v4482_v42  ;;  %830 = vmatprep.mubr.f32.mxu0 %v5020_v1  ;;  %v4568_v40 = vpack.c.bf16 %v852_v39, %v851_v36  ;;  %v502_v36 = vld [vmem:[%s5000_s3] sm:$0x1] }
 0x109   : > { %3320 = vmatprep.subr.bf16.mxu0 %v4487_v45  ;;  %3350 = vmatpush3.bf16.msra.mxu1 %v4532_v41 }
 0x10a   : > { %3352 = vmatprep.subr.bf16.mxu1 %v4534_v43 }
 0x10c   : > { %3322 = vmatpush1.bf16.msra.mxu0 %v4489_v48 }
 0x10d   : > { %3324 = vmatprep.subr.bf16.mxu0 %v4493_v51  ;;  %3354 = vmatpush3.bf16.msra.mxu1 %v4538_v50 }
 0x10e   : > { %3356 = vmatprep.subr.bf16.mxu1 %v4541_v52 }
 0x110   : > { %3326 = vmatpush1.bf16.msra.mxu0 %v4495_v54 }
 0x111   : > { %3328 = vmatprep.subr.bf16.mxu0 %v4499_v57  ;;  %3358 = vmatpush3.bf16.msra.mxu1 %v4544_v59 }
 0x112   : > { %3360 = vmatprep.subr.bf16.mxu1 %v4547_v61 }
 0x114   : > { %3330 = vmatpush1.bf16.msra.mxu0 %v4501_v60 }
 0x115   : > { %3332 = vmatprep.subr.bf16.mxu0 %v4505_v63  ;;  %3362 = vmatpush3.bf16.msra.mxu1 %v4550_v6 }
 0x116   : > { %3364 = vmatprep.subr.bf16.mxu1 %v4553_v9 }
 0x118   : > { %3334 = vmatpush1.bf16.msra.mxu0 %v4507_v4 }
 0x119   : > { %3336 = vmatprep.subr.bf16.mxu0 %v4511_v7  ;;  %3366 = vmatpush3.bf16.msra.mxu1 %v4556_v19 }
 0x11a   : > { %3368 = vmatprep.subr.bf16.mxu1 %v4559_v21 }
 0x11c   : > { %3338 = vmatpush1.bf16.msra.mxu0 %v4513_v12 }
 0x11d   : > { %3340 = vmatprep.subr.bf16.mxu0 %v4517_v17  ;;  %3370 = vmatpush3.bf16.msra.mxu1 %v4562_v32 }
 0x11e   : > { %3372 = vmatprep.subr.bf16.mxu1 %v4565_v33 }
 0x120   : > { %3342 = vmatpush1.bf16.msra.mxu0 %v4519_v20 }
 0x121   : > { %3344 = vmatprep.subr.bf16.mxu0 %v4523_v24  ;;  %3374 = vmatpush3.bf16.msra.mxu1 %v4568_v40 }
 0x124   : > { %3346 = vmatpush1.bf16.msra.mxu0 %v4525_v28 }
 0x125   : > { %3379 = vmatprep.subr.bf16.mxu0 %v5018_v0 }
 0x1d8   : > { %v3124_v46 = vpop.f32.mrb[0].mxu1 }
 0x1d9   : > { %v691_v47 = vpop.f32.mrb[1].mxu1  ;;  %v700_v56 = vadd.f32 %v3124_v46, %v4575_v44 }
 0x1da   : > { %v692_v49 = vadd.f32 %v4575_v44, %v691_v47  ;;  %v3125_v53 = vpop.f32.mrb[2].mxu1  ;;  %v569_v5 = vpop.f32.mrb[0].mxu0 }
 0x1db   : > { %v694_v55 = vpop.f32.mrb[3].mxu1  ;;  %v703_v2 = vadd.f32 %v3125_v53, %v4575_v44  ;;  %v3105_v10 = vpop.f32.mrb[1].mxu0  ;;  %v708_v13 = vmax.f32 %v700_v56, 0.0  ;;  %v570_v46 = vadd.f32 %v569_v5, %v502_v36  ;;  %v5063_v56 = vmov 0.0|0.0   ;;  %v3764_v5 = vld [vmem:[#allocation8 + $0x38] sm:$0xff]  }
 0x1dc   : > { %v695_v58 = vadd.f32 %v4575_v44, %v694_v55  ;;  %v706_v62 = vmax.f32 %v692_v49, 0.0  ;;  %v4640_v10 = vld [vmem:[%s4419_s20 + $0x18] sm:$0xff]  }
 0x1dd   : > { %v709_v18 = vmax.f32 %v703_v2, 0.0  ;;  %v573_v55 = vmax.f32 %v570_v46, 0.0  ;;  %v3762_v2 = vld [vmem:[#allocation8 + $0x28] sm:$0xff]  }
 0x1de   : > { %v707_v3 = vmax.f32 %v695_v58, 0.0 }
 0x1e0   : > { %v710_v15 = vadd.f32 %v707_v3, %v706_v62  ;;  %v3761_v62 = vld [vmem:[#allocation8 + $0x20] sm:$0xff]   ;;  %v3763_v3 = vld [vmem:[#allocation8 + $0x30] sm:$0xff]  }
 0x1e2   : > { %v711_v23 = vadd.f32 %v710_v15, %v708_v13  ;;  %v952_v13 = vunpack.c.h.bf16 %v4463_v30 }
 0x1e4   : > { %v712_v25 = vadd.f32 %v711_v23, %v709_v18 }
 0x1e6   : > { %v713_v27 = vrot.slane %v712_v25, 4 }
 0x1e8   : > { %v714_v29 = vadd.f32 %v713_v27, %v712_v25 }
 0x1ea   : > { %v715_v39 = vrot.slane %v714_v29, 2 }
 0x1ec   : > { %v716_v47 = vadd.f32 %v715_v39, %v714_v29 }
 0x1ee   : > { %v717_v49 = vrot.slane %v716_v47, 1 }
 0x1f0   : > { %v718_v53 = vadd.f32 %v717_v49, %v716_v47 }
 0x1f2   : > { %v720_v58 = vmul.f32 0.03125, %v718_v53 }
 0x1f4   : > { %v721_v0 = vmul.f32 %v720_v58, %v573_v55 }
 0x1f6   : > { %831 = vmatmul.mubr.f32.vlgmr.msra.gmra.mrb[2].mxu0 %v721_v0  ;;  %v869_v0 = vld [vmem:[#allocation11 + $0xf0] sm:$0xff] }
 0x1f7   : > { %3381 = vmatpush3.bf16.msra.mxu0 %v4440_v8  ;;  %3158 = vmatprep.mubr.msk.f32.mxu0 %vm4081_vm0, %v5020_v1  ;;  %v870_v8 = vld [vmem:[#allocation11 + $0xf8] sm:$0xff] }
 0x1f8   : > { %3382 = vmatprep.subr.bf16.mxu0 %v5063_v56 }
 0x1fb   : > { %3384 = vmatpush3.bf16.msra.mxu0 %v4443_v11  ;;  %v4602_v11 = vpack.c.bf16 %v870_v8, %v869_v0 }
 0x1fc   : > { %3385 = vmatprep.subr.bf16.mxu0 %v5063_v56 }
 0x1fd   : > { %3376 = vmatprep.subr.bf16.mxu1 %v4602_v11 }
 0x1ff   : > { %3387 = vmatpush3.bf16.msra.mxu0 %v4450_v16  ;;  %v853_v16 = vld [vmem:[#allocation11 + $0x70] sm:$0xff] }
 0x200   : > { %3388 = vmatprep.subr.bf16.mxu0 %v5063_v56 }
 0x203   : > { %3390 = vmatpush3.bf16.msra.mxu0 %v4455_v22  ;;  %v854_v22 = vld [vmem:[#allocation11 + $0x78] sm:$0xff] }
 0x204   : > { %3391 = vmatprep.subr.bf16.mxu0 %v5063_v56 }
 0x207   : > { %3393 = vmatpush3.bf16.msra.mxu0 %v4459_v26  ;;  %v4604_v26 = vpack.c.bf16 %v854_v22, %v853_v16 }
 0x208   : > { %3394 = vmatprep.subr.bf16.mxu0 %v5063_v56 }
 0x209   : > { %3378 = vmatpush3.bf16.msra.mxu1 %v4604_v26 }
 0x20b   : > { %3396 = vmatpush3.bf16.msra.mxu0 %v4466_v31  ;;  %v3757_v31 = vld [vmem:[#allocation8] sm:$0xff]  }
 0x20c   : > { %3397 = vmatprep.subr.bf16.mxu0 %v5063_v56  ;;  %3161 = vmatprep.subr.bf16.mxu1 %v3757_v31 }
 0x20f   : > { %3399 = vmatpush3.bf16.msra.mxu0 %v4470_v34  ;;  %v2674_v34 = vld [vmem:[%s4409_s22 + $0x1] sm:$0x1] }
 0x210   : > { %3400 = vmatprep.subr.bf16.mxu0 %v5063_v56 }
 0x213   : > { %3402 = vmatpush3.bf16.msra.mxu0 %v4474_v37  ;;  %v756_v37 = vlaneseq }
 0x214   : > { %3404 = vmatprep.subr.bf16.mxu0 %v4478_v38 }
 0x215   : > { %v757_v38 = vshrl.u32 %v756_v37, 7 }
 0x216   : > { %3159 = vmatmul.mubr.f32.vlgmr.msra.gmra.mrb[4].mxu0 %v2674_v34 }
 0x217   : > { %3406 = vmatpush1.bf16.msra.mxu0 %v4482_v42  ;;  %1331 = vmatprep.mubr.f32.mxu0 %v5020_v1  ;;  %v4626_v42 = vsub.s32 0, %v757_v38 }
 0x218   : > { %3408 = vmatprep.subr.bf16.mxu0 %v4487_v45  ;;  %v754_v45 = vld [vmem:[%s5004_s7] sm:$0x3] }
 0x21b   : > { %3410 = vmatpush1.bf16.msra.mxu0 %v4489_v48  ;;  %v4631_v48 = vsub.s32 1, %v757_v38  ;;  %v1004_v38 = vld [vmem:[%s5000_s3] sm:$0x1] }
 0x21c   : > { %3412 = vmatprep.subr.bf16.mxu0 %v4493_v51  ;;  %v759_v51 = vrot.slane %v754_v45, %v4626_v42 }
 0x21f   : > { %3414 = vmatpush1.bf16.msra.mxu0 %v4495_v54  ;;  %v763_v54 = vrot.slane %v754_v45, %v4631_v48 }
 0x220   : > { %3416 = vmatprep.subr.bf16.mxu0 %v4499_v57 }
 0x223   : > { %3418 = vmatpush1.bf16.msra.mxu0 %v4501_v60 }
 0x224   : > { %3420 = vmatprep.subr.bf16.mxu0 %v4505_v63 }
 0x227   : > { %3422 = vmatpush1.bf16.msra.mxu0 %v4507_v4  ;;  %v4636_v4 = vld [vmem:[%s4419_s20 + $0x10] sm:$0xff]  }
 0x228   : > { %3424 = vmatprep.subr.bf16.mxu0 %v4511_v7 }
 0x22b   : > { %3426 = vmatpush1.bf16.msra.mxu0 %v4513_v12 }
 0x22c   : > { %3428 = vmatprep.subr.bf16.mxu0 %v4517_v17 }
 0x22f   : > { %3430 = vmatpush1.bf16.msra.mxu0 %v4519_v20  ;;  %v3758_v20 = vld [vmem:[#allocation8 + $0x8] sm:$0xff]  }
 0x230   : > { %3432 = vmatprep.subr.bf16.mxu0 %v4523_v24  ;;  %v3759_v24 = vld [vmem:[#allocation8 + $0x10] sm:$0xff]  }
 0x233   : > { %3434 = vmatpush1.bf16.msra.mxu0 %v4525_v28  ;;  %v3760_v28 = vld [vmem:[#allocation8 + $0x18] sm:$0xff]  }
 0x234   : > { %3467 = vmatprep.subr.bf16.mxu0 %v5063_v56 }
 0x2c9   : > { %v832_v57 = vpop.f32.mrb[2].mxu0 }
 0x2ca   : > { %v833_v60 = vadd.f32 %v832_v57, %v759_v51  ;;  %v834_v63 = vpop.f32.mrb[3].mxu0 }
 0x2cb   : > { %v835_v7 = vadd.f32 %v834_v63, %v763_v54 }
 0x2cc   : > { %v837_v17 = vmax.f32 %v833_v60, 0.0 }
 0x2cd   : > { %v838_v12 = vmax.f32 %v835_v7, 0.0 }
 0x2cf   : > { %936 = vmatprep.mubr.f32.mxu1 %v838_v12  ;;  %v3767_v12 = vld [vmem:[#allocation8] sm:$0xff]  }
 0x2d0   : > { %937 = vmatmul.mubr.f32.vlgmr.msra.gmra.mrb[4].mxu1 %v837_v17  ;;  %v1490_v17 = vld [vmem:[#allocation7] sm:$0xff] }
 0x2d1   : > { %3162 = vmatpush3.bf16.msra.mxu1 %v3757_v31  ;;  %3177 = vmatprep.mubr.bf16.mxu1 %v4636_v4 }
 0x2d2   : > { %3163 = vmatprep.subr.bf16.mxu1 %v3758_v20 }
 0x2d5   : > { %3164 = vmatpush3.bf16.msra.mxu1 %v3758_v20  ;;  %v1491_v20 = vld [vmem:[#allocation7 + $0x8] sm:$0xff] }
 0x2d6   : > { %3165 = vmatprep.subr.bf16.mxu1 %v3759_v24 }
 0x2d9   : > { %3166 = vmatpush3.bf16.msra.mxu1 %v3759_v24  ;;  %v4682_v24 = vpack.c.bf16 %v1491_v20, %v1490_v17  ;;  %v1733_v17 = vld [vmem:[#allocation10 + $0x40] sm:$0xff]  ;;  %v1735_v20 = vld [vmem:[#allocation10 + $0x50] sm:$0xff] }
 0x2da   : > { %3167 = vmatprep.subr.bf16.mxu1 %v3760_v28 }
 0x2dd   : > { %3168 = vmatpush3.bf16.msra.mxu1 %v3760_v28  ;;  %v1492_v28 = vld [vmem:[#allocation7 + $0x10] sm:$0xff] }
 0x2de   : > { %3169 = vmatprep.subr.bf16.mxu1 %v3761_v62 }
 0x2e1   : > { %3170 = vmatpush3.bf16.msra.mxu1 %v3761_v62  ;;  %v1493_v62 = vld [vmem:[#allocation7 + $0x18] sm:$0xff] }
 0x2e2   : > { %3171 = vmatprep.subr.bf16.mxu1 %v3762_v2 }
 0x2e5   : > { %3172 = vmatpush3.bf16.msra.mxu1 %v3762_v2  ;;  %v4686_v2 = vpack.c.bf16 %v1493_v62, %v1492_v28  ;;  %v4742_v28 = vpack.c.bf16 %v1735_v20, %v1733_v17  ;;  %v1738_v62 = vld [vmem:[#allocation10 + $0x68] sm:$0xff]  ;;  %v1844_v20 = vld [vmem:[#allocation11 + $0x10] sm:$0xff] }
 0x2e6   : > { %3173 = vmatprep.subr.bf16.mxu1 %v3763_v3 }
 0x2e9   : > { %3174 = vmatpush3.bf16.msra.mxu1 %v3763_v3  ;;  %v1494_v3 = vld [vmem:[#allocation7 + $0x20] sm:$0xff] }
 0x2ea   : > { %3175 = vmatprep.subr.bf16.mxu1 %v3764_v5 }
 0x2ed   : > { %3176 = vmatpush3.bf16.msra.mxu1 %v3764_v5  ;;  %v1495_v5 = vld [vmem:[#allocation7 + $0x28] sm:$0xff] }
 0x2ee   : > { %3436 = vmatprep.subr.bf16.mxu1 %v4530_v35  ;;  %v1071_v35 = vpop.f32.mrb[4].mxu0 }
 0x2ef   : > { %v1072_v45 = vadd.f32 %v1071_v35, %v1004_v38  ;;  %v4690_v35 = vpack.c.bf16 %v1495_v5, %v1494_v3  ;;  %v1740_v3 = vld [vmem:[#allocation10 + $0x78] sm:$0xff] }
 0x2f0   : > { %3178 = vmatmul.mubr.bf16.vlgmr.msra.gmra.mrb[8].mxu1 %v4640_v10  ;;  %v4746_v5 = vpack.c.bf16 %v1740_v3, %v1738_v62  ;;  %v1845_v62 = vld [vmem:[#allocation11 + $0x18] sm:$0xff]  ;;  %v1862_v3 = vld [vmem:[#allocation11 + $0xa0] sm:$0xff] }
 0x2f1   : > { %3438 = vmatpush3.bf16.msra.mxu1 %v4532_v41  ;;  %v3160_v41 = vpop.f32.mrb[5].mxu0  ;;  %v1075_v57 = vmax.f32 %v1072_v45, 0.0  ;;  %v1732_v45 = vld [vmem:[#allocation10 + $0x38] sm:$0xff] }
 0x2f2   : > { %3440 = vmatprep.subr.bf16.mxu1 %v4534_v43  ;;  %v1496_v41 = vld [vmem:[#allocation7 + $0x30] sm:$0xff] }
 0x2f5   : > { %3442 = vmatpush3.bf16.msra.mxu1 %v4538_v50  ;;  %v871_v50 = vld [vmem:[%s5006_s9] sm:$0x1] }
 0x2f6   : > { %3444 = vmatprep.subr.bf16.mxu1 %v4541_v52 }
 0x2f9   : > { %3446 = vmatpush3.bf16.msra.mxu1 %v4544_v59 }
 0x2fa   : > { %3448 = vmatprep.subr.bf16.mxu1 %v4547_v61 }
 0x2fd   : > { %3450 = vmatpush3.bf16.msra.mxu1 %v4550_v6 }
 0x2fe   : > { %3452 = vmatprep.subr.bf16.mxu1 %v4553_v9 }
 0x301   : > { %3454 = vmatpush3.bf16.msra.mxu1 %v4556_v19 }
 0x302   : > { %3456 = vmatprep.subr.bf16.mxu1 %v4559_v21 }
 0x305   : > { %3458 = vmatpush3.bf16.msra.mxu1 %v4562_v32  ;;  %v949_v32 = vunpack.c.l.bf16 %v4447_v14 }
 0x306   : > { %3460 = vmatprep.subr.bf16.mxu1 %v4565_v33  ;;  %v950_v33 = vunpack.c.h.bf16 %v4447_v14 }
 0x309   : > { %3462 = vmatpush3.bf16.msra.mxu1 %v4568_v40  ;;  %v951_v40 = vunpack.c.l.bf16 %v4463_v30 }
 0x30a   : > { %3464 = vmatprep.subr.bf16.mxu1 %v4602_v11 }
 0x30d   : > { %3466 = vmatpush3.bf16.msra.mxu1 %v4604_v26 }
 0x30e   : > { %3216 = vmatprep.subr.bf16.mxu1 %v3767_v12 }
 0x3a3   : > { %v2882_v43 = vpop.f32.mrb[4].mxu1 }
 0x3a4   : > { %v2883_v52 = vpop.f32.mrb[5].mxu1 }
 0x3a5   : > { %v2884_v59 = vadd.f32 %v2883_v52, %v2882_v43  ;;  %v1497_v43 = vld [vmem:[#allocation7 + $0x38] sm:$0xff] }
 0x3a6   : > { %v4694_v52 = vpack.c.bf16 %v1497_v43, %v1496_v41  ;;  %v1737_v41 = vld [vmem:[#allocation10 + $0x60] sm:$0xff]  ;;  %v1739_v43 = vld [vmem:[#allocation10 + $0x70] sm:$0xff] }
 0x3a7   : > { %v939_v61 = vadd.f32 %v2884_v59, %v871_v50  ;;  %v1498_v50 = vld [vmem:[#allocation7 + $0x40] sm:$0xff]  ;;  %v1499_v59 = vld [vmem:[#allocation7 + $0x48] sm:$0xff] }
 0x3a9   : > { %v2669_v6 = vmul.f32 -1.442695, %v939_v61  ;;  %v4697_v61 = vpack.c.bf16 %v1499_v59, %v1498_v50  ;;  %v4748_v50 = vpack.c.bf16 %v1739_v43, %v1737_v41  ;;  %v1742_v59 = vld [vmem:[#allocation10 + $0x88] sm:$0xff]  ;;  %v4787_v43 = vpack.c.bf16 %v1845_v62, %v1844_v20 }
 0x3aa   : > { %v1863_v41 = vld [vmem:[#allocation11 + $0xa8] sm:$0xff] }
 0x3ab   : > { %3795 = vpow2.f32 %v2669_v6  ;;  %v1500_v6 = vld [vmem:[#allocation7 + $0x50] sm:$0xff] }
 0x3b5   : > { %v3796_v9 = vpop.eup %3795 }
 0x3b6   : > { %v945_v19 = vadd.f32 1.0, %v3796_v9  ;;  %v1501_v9 = vld [vmem:[#allocation7 + $0x58] sm:$0xff] }
 0x3b8   : > { %3797 = vrcp.f32 %v945_v19  ;;  %v4701_v19 = vpack.c.bf16 %v1501_v9, %v1500_v6  ;;  %v1744_v6 = vld [vmem:[#allocation10 + $0x98] sm:$0xff] }
 0x3b9   : > { %v4752_v9 = vpack.c.bf16 %v1744_v6, %v1742_v59  ;;  %v4790_v59 = vpack.c.bf16 %v1863_v41, %v1862_v3  ;;  %v1846_v6 = vld [vmem:[#allocation11 + $0x20] sm:$0xff]  ;;  %v1855_v41 = vld [vmem:[#allocation11 + $0x68] sm:$0xff] }
 0x3ba   : > { %v1854_v3 = vld [vmem:[#allocation11 + $0x60] sm:$0xff] }
 0x3c2   : > { %v3798_v21 = vpop.eup %3797 }
 0x3c3   : > { %v948_v15 = vadd.f32 1.0, %v3798_v21  ;;  %v3179_v18 = vpop.f32.mrb[8].mxu1  ;;  %v1502_v21 = vld [vmem:[#allocation7 + $0x60] sm:$0xff] }
 0x3c4   : > { %v1193_v23 = vpop.f32.mrb[9].mxu1  ;;  %v1202_v14 = vadd.f32 %v3179_v18, %v4575_v44  ;;  %v2699_v18 = vld [vmem:[%s4409_s22 + $0x2] sm:$0x1] }
 0x3c5   : > { %v956_v25 = vrot.slane %v948_v15, %v4626_v42  ;;  %v3180_v27 = vpop.f32.mrb[10].mxu1  ;;  %v1194_v29 = vadd.f32 %v4575_v44, %v1193_v23  ;;  %v1255_v23 = vld [vmem:[%s5004_s7] sm:$0x3] }
 0x3c6   : > { %v1196_v36 = vpop.f32.mrb[11].mxu1  ;;  %v1205_v0 = vadd.f32 %v3180_v27, %v4575_v44  ;;  %v1210_v11 = vmax.f32 %v1202_v14, 0.0  ;;  %v1264_v27 = vrot.slane %v1255_v23, %v4631_v48 }
 0x3c7   : > { %v957_v39 = vmul.f32 %v956_v25, %v949_v32  ;;  %v958_v46 = vmul.f32 %v956_v25, %v950_v33  ;;  %v959_v47 = vmul.f32 %v956_v25, %v951_v40  ;;  %v960_v49 = vmul.f32 %v956_v25, %v952_v13  ;;  %v1503_v32 = vld [vmem:[#allocation7 + $0x68] sm:$0xff]  ;;  %v1504_v40 = vld [vmem:[#allocation7 + $0x70] sm:$0xff]  ;;  %v1505_v13 = vld [vmem:[#allocation7 + $0x78] sm:$0xff] }
 0x3c8   : > { %v1197_v55 = vadd.f32 %v4575_v44, %v1196_v36  ;;  %v1208_v58 = vmax.f32 %v1194_v29, 0.0  ;;  %v1211_v22 = vmax.f32 %v1205_v0, 0.0  ;;  %v4705_v33 = vpack.c.bf16 %v1503_v32, %v1502_v21  ;;  %v3772_v0 = vld [vmem:[#allocation8 + $0x28] sm:$0xff]   ;;  %v1741_v21 = vld [vmem:[#allocation10 + $0x80] sm:$0xff]  ;;  %v1743_v32 = vld [vmem:[#allocation10 + $0x90] sm:$0xff] }
 0x3c9   : > { %v2779_v53 = vpack.c.bf16 %v958_v46, %v957_v39  ;;  %v2784_v30 = vpack.c.bf16 %v960_v49, %v959_v47  ;;  %v4709_v15 = vpack.c.bf16 %v1505_v13, %v1504_v40  ;;  %v1260_v25 = vrot.slane %v1255_v23, %v4626_v42  ;;  %v4721_v46 = vld [vmem:[%s4419_s20 + $0x20] sm:$0xff]   ;;  %v1746_v13 = vld [vmem:[#allocation10 + $0xa8] sm:$0xff] }
 0x3ca   : > { %v1209_v8 = vmax.f32 %v1197_v55, 0.0  ;;  %5064 = vst [vmem:[#allocation22_spill] sm:$0xff] %v4721_v46  ;;  %v3768_v55 = vld [vmem:[#allocation8 + $0x8] sm:$0xff]   ;;  %v4754_v40 = vpack.c.bf16 %v1743_v32, %v1741_v21  ;;  %v1864_v32 = vld [vmem:[#allocation11 + $0xb0] sm:$0xff] }
 0x3cb   : > { %2780 = vst [vmem:[%s4673_s27] sm:$0xff] %v2779_v53   ;;  %2816 = vst [vmem:[%s4673_s27 + $0x8] sm:$0xff] %v2784_v30   ;;  %v3769_v53 = vld [vmem:[#allocation8 + $0x10] sm:$0xff]   ;;  %v3770_v30 = vld [vmem:[#allocation8 + $0x18] sm:$0xff]  }
 0x3cc   : > { %v1212_v16 = vadd.f32 %v1209_v8, %v1208_v58  ;;  %v3771_v58 = vld [vmem:[#allocation8 + $0x20] sm:$0xff]   ;;  %v3773_v8 = vld [vmem:[#allocation8 + $0x30] sm:$0xff]   ;;  %v1847_v21 = vld [vmem:[#allocation11 + $0x28] sm:$0xff] }
 0x3ce   : > { %v1213_v26 = vadd.f32 %v1212_v16, %v1210_v11  ;;  %v3774_v11 = vld [vmem:[#allocation8 + $0x38] sm:$0xff]   ;;  %v4725_v16 = vld [vmem:[%s4419_s20 + $0x28] sm:$0xff]  }
 0x3cf   : > { %5065 = vst [vmem:[#allocation23_spill] sm:$0xff] %v4725_v16 }
 0x3d0   : > { %v1214_v31 = vadd.f32 %v1213_v26, %v1211_v22  ;;  %v1726_v22 = vld [vmem:[#allocation10 + $0x8] sm:$0xff]  ;;  %v1728_v26 = vld [vmem:[#allocation10 + $0x18] sm:$0xff] }
 0x3d2   : > { %v1215_v34 = vrot.slane %v1214_v31, 4 }
 0x3d4   : > { %v1216_v37 = vadd.f32 %v1215_v34, %v1214_v31  ;;  %v4728_v31 = vpack.c.bf16 %v1728_v26, %v1726_v22  ;;  %v1725_v34 = vld [vmem:[#allocation10] sm:$0xff]  ;;  %v1755_v22 = vld [vmem:[#allocation10 + $0xf0] sm:$0xff] }
 0x3d6   : > { %v1217_v44 = vrot.slane %v1216_v37, 2 }
 0x3d8   : > { %v1218_v51 = vadd.f32 %v1217_v44, %v1216_v37  ;;  %v1727_v37 = vld [vmem:[#allocation10 + $0x10] sm:$0xff]  ;;  %v1730_v44 = vld [vmem:[#allocation10 + $0x28] sm:$0xff] }
 0x3d9   : > { %v4730_v38 = vpack.c.bf16 %v1727_v37, %v1725_v34  ;;  %v1858_v34 = vld [vmem:[#allocation11 + $0x80] sm:$0xff]  ;;  %v1859_v37 = vld [vmem:[#allocation11 + $0x88] sm:$0xff] }
 0x3da   : > { %v1219_v54 = vrot.slane %v1218_v51, 1 }
 0x3dc   : > { %v1220_v60 = vadd.f32 %v1219_v54, %v1218_v51  ;;  %v4734_v51 = vpack.c.bf16 %v1732_v45, %v1730_v44  ;;  %v1729_v54 = vld [vmem:[#allocation10 + $0x20] sm:$0xff]  ;;  %v4779_v45 = vpack.c.bf16 %v1859_v37, %v1858_v34 }
 0x3dd   : > { %v1842_v44 = vld [vmem:[#allocation11] sm:$0xff] }
 0x3de   : > { %v1221_v63 = vmul.f32 0.03125, %v1220_v60 }
 0x3e0   : > { %v1222_v7 = vmul.f32 %v1221_v63, %v1075_v57  ;;  %v1731_v57 = vld [vmem:[#allocation10 + $0x30] sm:$0xff]  ;;  %v1734_v63 = vld [vmem:[#allocation10 + $0x48] sm:$0xff] }
 0x3e1   : > { %v4736_v60 = vpack.c.bf16 %v1731_v57, %v1729_v54  ;;  %v1843_v54 = vld [vmem:[#allocation11 + $0x8] sm:$0xff]  ;;  %v1860_v57 = vld [vmem:[#allocation11 + $0x90] sm:$0xff] }
 0x3e2   : > { %1332 = vmatmul.mubr.f32.vlgmr.msra.gmra.mrb[6].mxu0 %v1222_v7  ;;  %v1736_v7 = vld [vmem:[#allocation10 + $0x58] sm:$0xff] }
 0x3e3   : > { %3213 = vmatprep.mubr.msk.f32.mxu0 %vm4081_vm0, %v5020_v1  ;;  %3469 = vmatpush3.bf16.msra.mxu0 %v4682_v24 }
 0x3e4   : > { %3470 = vmatprep.subr.bf16.mxu0 %v5063_v56 }
 0x3e7   : > { %3472 = vmatpush3.bf16.msra.mxu0 %v4686_v2 }
 0x3e8   : > { %3473 = vmatprep.subr.bf16.mxu0 %v5063_v56 }
 0x3eb   : > { %3475 = vmatpush3.bf16.msra.mxu0 %v4690_v35 }
 0x3ec   : > { %3476 = vmatprep.subr.bf16.mxu0 %v5063_v56 }
 0x3ef   : > { %3478 = vmatpush3.bf16.msra.mxu0 %v4694_v52 }
 0x3f0   : > { %3479 = vmatprep.subr.bf16.mxu0 %v5063_v56 }
 0x3f3   : > { %3481 = vmatpush3.bf16.msra.mxu0 %v4697_v61 }
 0x3f4   : > { %3482 = vmatprep.subr.bf16.mxu0 %v5063_v56 }
 0x3f7   : > { %3484 = vmatpush3.bf16.msra.mxu0 %v4701_v19 }
 0x3f8   : > { %3485 = vmatprep.subr.bf16.mxu0 %v5063_v56 }
 0x3fb   : > { %3487 = vmatpush3.bf16.msra.mxu0 %v4705_v33 }
 0x3fc   : > { %3488 = vmatprep.subr.bf16.mxu0 %v5063_v56 }
 0x3ff   : > { %3490 = vmatpush3.bf16.msra.mxu0 %v4709_v15 }
 0x400   : > { %3492 = vmatprep.subr.bf16.mxu0 %v4728_v31 }
 0x402   : > { %3214 = vmatmul.mubr.f32.vlgmr.msra.gmra.mrb[8].mxu0 %v2699_v18  ;;  %v1748_v18 = vld [vmem:[#allocation10 + $0xb8] sm:$0xff] }
 0x403   : > { %1833 = vmatprep.mubr.f32.mxu0 %v5020_v1  ;;  %3494 = vmatpush1.bf16.msra.mxu0 %v4730_v38  ;;  %v4758_v23 = vpack.c.bf16 %v1748_v18, %v1746_v13  ;;  %v1865_v13 = vld [vmem:[#allocation11 + $0xb8] sm:$0xff]  ;;  %v4793_v18 = vpack.c.bf16 %v1847_v21, %v1846_v6  ;;  %v4817_v6 = vpack.c.bf16 %v1855_v41, %v1854_v3 }
 0x404   : > { %3496 = vmatprep.subr.bf16.mxu0 %v4734_v51  ;;  %v4831_v3 = vld [vmem:[%s5002_s5] ss:$0 sm:$0xff] }
 0x405   : > { %5068 = vst [vmem:[#allocation26_spill] sm:$0xff] %v4817_v6 }
 0x407   : > { %3498 = vmatpush1.bf16.msra.mxu0 %v4736_v60 }
 0x4b5   : > { %v1333_v29 = vpop.f32.mrb[6].mxu0 }
 0x4b6   : > { %v1334_v36 = vadd.f32 %v1333_v29, %v1260_v25  ;;  %v1335_v39 = vpop.f32.mrb[7].mxu0  ;;  %v1745_v25 = vld [vmem:[#allocation10 + $0xa0] sm:$0xff] }
 0x4b7   : > { %v1336_v47 = vadd.f32 %v1335_v39, %v1264_v27  ;;  %v1747_v27 = vld [vmem:[#allocation10 + $0xb0] sm:$0xff]  ;;  %v1752_v39 = vld [vmem:[#allocation10 + $0xd8] sm:$0xff] }
 0x4b8   : > { %v1338_v14 = vmax.f32 %v1334_v36, 0.0  ;;  %v4760_v29 = vpack.c.bf16 %v1747_v27, %v1745_v25  ;;  %v1750_v36 = vld [vmem:[#allocation10 + $0xc8] sm:$0xff]  ;;  %v4796_v25 = vpack.c.bf16 %v1865_v13, %v1864_v32  ;;  %v1848_v27 = vld [vmem:[#allocation11 + $0x30] sm:$0xff]  ;;  %v1372_v32 = vld [vmem:[%s5006_s9] sm:$0x1] }
 0x4b9   : > { %v1339_v49 = vmax.f32 %v1336_v47, 0.0  ;;  %v4764_v47 = vpack.c.bf16 %v1752_v39, %v1750_v36  ;;  %v1849_v36 = vld [vmem:[#allocation11 + $0x38] sm:$0xff]  ;;  %v1866_v39 = vld [vmem:[#allocation11 + $0xc0] sm:$0xff] }
 0x4bb   : > { %1437 = vmatprep.mubr.f32.mxu1 %v1339_v49  ;;  %v1749_v49 = vld [vmem:[#allocation10 + $0xc0] sm:$0xff] }
 0x4bc   : > { %1438 = vmatmul.mubr.f32.vlgmr.msra.gmra.mrb[6].mxu1 %v1338_v14  ;;  %v1751_v14 = vld [vmem:[#allocation10 + $0xd0] sm:$0xff] }
 0x4bd   : > { %3217 = vmatpush3.bf16.msra.mxu1 %v3767_v12  ;;  %3232 = vmatprep.mubr.bf16.mxu1 %v4721_v46  ;;  %v4740_v12 = vpack.c.bf16 %v1736_v7, %v1734_v63  ;;  %v1861_v63 = vld [vmem:[#allocation11 + $0x98] sm:$0xff]  ;;  %v4781_v7 = vpack.c.bf16 %v1843_v54, %v1842_v44  ;;  %v1852_v44 = vld [vmem:[#allocation11 + $0x50] sm:$0xff] }
 0x4be   : > { %3218 = vmatprep.subr.bf16.mxu1 %v3768_v55  ;;  %v4783_v17 = vpack.c.bf16 %v1861_v63, %v1860_v57  ;;  %v1853_v54 = vld [vmem:[#allocation11 + $0x58] sm:$0xff]  ;;  %v1870_v57 = vld [vmem:[#allocation11 + $0xe0] sm:$0xff]  ;;  %v1871_v63 = vld [vmem:[#allocation11 + $0xe8] sm:$0xff] }
 0x4bf   : > { %3500 = vmatprep.subr.bf16.mxu0 %v4740_v12  ;;  %v4811_v20 = vpack.c.bf16 %v1853_v54, %v1852_v44  ;;  %v4814_v62 = vpack.c.bf16 %v1871_v63, %v1870_v57  ;;  %v1452_v44 = vunpack.c.l.bf16 %v4640_v10  ;;  %v1453_v54 = vunpack.c.h.bf16 %v4640_v10 }
 0x4c0   : > { %3502 = vmatpush1.bf16.msra.mxu0 %v4742_v28 }
 0x4c1   : > { %3219 = vmatpush3.bf16.msra.mxu1 %v3768_v55  ;;  %3504 = vmatprep.subr.bf16.mxu0 %v4746_v5  ;;  %5066 = vst [vmem:[#allocation24_spill] sm:$0xff] %v4811_v20  ;;  %5067 = vst [vmem:[#allocation25_spill] sm:$0xff] %v4814_v62 }
 0x4c2   : > { %3220 = vmatprep.subr.bf16.mxu1 %v3769_v53 }
 0x4c4   : > { %3506 = vmatpush1.bf16.msra.mxu0 %v4748_v50 }
 0x4c5   : > { %3221 = vmatpush3.bf16.msra.mxu1 %v3769_v53  ;;  %3508 = vmatprep.subr.bf16.mxu0 %v4752_v9  ;;  %v4768_v53 = vpack.c.bf16 %v1751_v14, %v1749_v49  ;;  %v1867_v49 = vld [vmem:[#allocation11 + $0xc8] sm:$0xff]  ;;  %v4799_v14 = vpack.c.bf16 %v1849_v36, %v1848_v27 }
 0x4c6   : > { %3222 = vmatprep.subr.bf16.mxu1 %v3770_v30 }
 0x4c8   : > { %3510 = vmatpush1.bf16.msra.mxu0 %v4754_v40 }
 0x4c9   : > { %3223 = vmatpush3.bf16.msra.mxu1 %v3770_v30  ;;  %3512 = vmatprep.subr.bf16.mxu0 %v4758_v23 }
 0x4ca   : > { %3224 = vmatprep.subr.bf16.mxu1 %v3771_v58 }
 0x4cc   : > { %3514 = vmatpush1.bf16.msra.mxu0 %v4760_v29 }
 0x4cd   : > { %3225 = vmatpush3.bf16.msra.mxu1 %v3771_v58  ;;  %3516 = vmatprep.subr.bf16.mxu0 %v4764_v47  ;;  %v1754_v58 = vld [vmem:[#allocation10 + $0xe8] sm:$0xff] }
 0x4ce   : > { %3226 = vmatprep.subr.bf16.mxu1 %v3772_v0 }
 0x4d0   : > { %3518 = vmatpush1.bf16.msra.mxu0 %v4768_v53 }
 0x4d1   : > { %3227 = vmatpush3.bf16.msra.mxu1 %v3772_v0  ;;  %v1756_v0 = vld [vmem:[#allocation10 + $0xf8] sm:$0xff] }
 0x4d2   : > { %3228 = vmatprep.subr.bf16.mxu1 %v3773_v8 }
 0x4d5   : > { %3229 = vmatpush3.bf16.msra.mxu1 %v3773_v8  ;;  %v4766_v55 = vpop.f32.mrb[8].mxu0  ;;  %v4772_v8 = vpack.c.bf16 %v1756_v0, %v1754_v58  ;;  %v1850_v58 = vld [vmem:[#allocation11 + $0x40] sm:$0xff]  ;;  %v1851_v0 = vld [vmem:[#allocation11 + $0x48] sm:$0xff] }
 0x4d6   : > { %3230 = vmatprep.subr.bf16.mxu1 %v3774_v11  ;;  %v3215_v30 = vpop.f32.mrb[9].mxu0  ;;  %v4805_v34 = vpack.c.bf16 %v1851_v0, %v1850_v58 }
 0x4d7   : > { %3520 = vmatprep.subr.bf16.mxu0 %v4772_v8  ;;  %v4802_v30 = vpack.c.bf16 %v1867_v49, %v1866_v39 }
 0x4d9   : > { %3231 = vmatpush3.bf16.msra.mxu1 %v3774_v11  ;;  %v1753_v11 = vld [vmem:[#allocation10 + $0xe0] sm:$0xff] }
 0x4da   : > { %v4774_v26 = vpack.c.bf16 %v1755_v22, %v1753_v11  ;;  %3524 = vmatprep.subr.bf16.mxu1 %v4779_v45  ;;  %v1868_v11 = vld [vmem:[#allocation11 + $0xd0] sm:$0xff]  ;;  %v1869_v22 = vld [vmem:[#allocation11 + $0xd8] sm:$0xff] }
 0x4db   : > { %v4808_v37 = vpack.c.bf16 %v1869_v22, %v1868_v11  ;;  %v1450_v11 = vunpack.c.l.bf16 %v4636_v4  ;;  %v1451_v22 = vunpack.c.h.bf16 %v4636_v4 }
 0x4dc   : > { %3233 = vmatmul.mubr.bf16.vlgmr.msra.gmra.mrb[12].mxu1 %v4725_v16  ;;  %3522 = vmatpush1.bf16.msra.mxu0 %v4774_v26 }
 0x4dd   : > { %3555 = vmatprep.subr.bf16.mxu0 %v5063_v56  ;;  %3526 = vmatpush3.bf16.msra.mxu1 %v4781_v7 }
 0x4de   : > { %3528 = vmatprep.subr.bf16.mxu1 %v4783_v17 }
 0x4e1   : > { %3530 = vmatpush3.bf16.msra.mxu1 %v4787_v43 }
 0x4e2   : > { %3532 = vmatprep.subr.bf16.mxu1 %v4790_v59 }
 0x4e5   : > { %3534 = vmatpush3.bf16.msra.mxu1 %v4793_v18 }
 0x4e6   : > { %3536 = vmatprep.subr.bf16.mxu1 %v4796_v25 }
 0x4e9   : > { %3538 = vmatpush3.bf16.msra.mxu1 %v4799_v14 }
 0x4ea   : > { %3540 = vmatprep.subr.bf16.mxu1 %v4802_v30 }
 0x4ed   : > { %3542 = vmatpush3.bf16.msra.mxu1 %v4805_v34 }
 0x4ee   : > { %3544 = vmatprep.subr.bf16.mxu1 %v4808_v37 }
 0x4f1   : > { %3546 = vmatpush3.bf16.msra.mxu1 %v4811_v20 }
 0x4f2   : > { %3548 = vmatprep.subr.bf16.mxu1 %v4814_v62 }
 0x4f5   : > { %3550 = vmatpush3.bf16.msra.mxu1 %v4817_v6 }
 0x58f   : > { %v2944_v21 = vpop.f32.mrb[6].mxu1 }
 0x590   : > { %v2945_v13 = vpop.f32.mrb[7].mxu1 }
 0x591   : > { %v2946_v27 = vadd.f32 %v2945_v13, %v2944_v21 }
 0x593   : > { %v1440_v36 = vadd.f32 %v2946_v27, %v1372_v32 }
 0x595   : > { %v2690_v39 = vmul.f32 -1.442695, %v1440_v36 }
 0x597   : > { %3799 = vpow2.f32 %v2690_v39 }
 0x5a1   : > { %v3800_v49 = vpop.eup %3799 }
 0x5a2   : > { %v1446_v58 = vadd.f32 1.0, %v3800_v49 }
 0x5a4   : > { %3801 = vrcp.f32 %v1446_v58 }
 0x5ae   : > { %v3802_v0 = vpop.eup %3801 }
 0x5af   : > { %v1449_v57 = vadd.f32 1.0, %v3802_v0  ;;  %v3234_v63 = vpop.f32.mrb[12].mxu1 }
 0x5b0   : > { %v1695_v41 = vpop.f32.mrb[13].mxu1  ;;  %v1704_v49 = vadd.f32 %v3234_v63, %v4831_v3 }
 0x5b1   : > { %v1457_v21 = vrot.slane %v1449_v57, %v4626_v42  ;;  %v3235_v32 = vpop.f32.mrb[14].mxu1  ;;  %v1696_v13 = vadd.f32 %v4831_v3, %v1695_v41 }
 0x5b2   : > { %v1698_v4 = vpop.f32.mrb[15].mxu1  ;;  %v1707_v46 = vadd.f32 %v3235_v32, %v4831_v3  ;;  %v1712_v57 = vmax.f32 %v1704_v49, 0.0  ;;  %v5074_v49 = vld [vmem:[#allocation23_spill] sm:$0xff] }
 0x5b3   : > { %v1458_v27 = vmul.f32 %v1457_v21, %v1450_v11  ;;  %v1459_v36 = vmul.f32 %v1457_v21, %v1451_v22  ;;  %v1460_v39 = vmul.f32 %v1457_v21, %v1452_v44  ;;  %v1461_v10 = vmul.f32 %v1457_v21, %v1453_v54  ;;  %v1506_v54 = vld [vmem:[%s5000_s3] sm:$0x1] }
 0x5b4   : > { %v1699_v58 = vadd.f32 %v4831_v3, %v1698_v4  ;;  %v1710_v16 = vmax.f32 %v1696_v13, 0.0  ;;  %v1713_v41 = vmax.f32 %v1707_v46, 0.0  ;;  %v1574_v21 = vadd.f32 %v4766_v55, %v1506_v54  ;;  %v3783_v55 = vld [vmem:[#allocation8 + $0x30] sm:$0xff]  }
 0x5b5   : > { %v2789_v0 = vpack.c.bf16 %v1459_v36, %v1458_v27  ;;  %v2794_v1 = vpack.c.bf16 %v1461_v10, %v1460_v39  ;;  %v5069_v46 = vmov 0.0  }
 0x5b6   : > { %v1711_v6 = vmax.f32 %v1699_v58, 0.0  ;;  %v1577_v32 = vmax.f32 %v1574_v21, 0.0  ;;  %v1954_v58 = vunpack.c.l.bf16 %v5074_v49 }
 0x5b7   : > { %2817 = vst [vmem:[%s4673_s27 + $0x10] sm:$0xff] %v2789_v0   ;;  %2818 = vst [vmem:[%s4673_s27 + $0x18] sm:$0xff] %v2794_v1   ;;  %v1955_v0 = vunpack.c.h.bf16 %v5074_v49 }
 0x5b8   : > { %v1714_v62 = vadd.f32 %v1711_v6, %v1710_v16  ;;  %v5073_v6 = vld [vmem:[#allocation22_spill] sm:$0xff] }
 0x5b9   : > { %v1952_v39 = vunpack.c.l.bf16 %v5073_v6  ;;  %v1953_v10 = vunpack.c.h.bf16 %v5073_v6 }
 0x5ba   : > { %v1715_v20 = vadd.f32 %v1714_v62, %v1712_v57 }
 0x5bc   : > { %v1716_v11 = vadd.f32 %v1715_v20, %v1713_v41 }
 0x5be   : > { %v1717_v22 = vrot.slane %v1716_v11, 4 }
 0x5c0   : > { %v1718_v44 = vadd.f32 %v1717_v22, %v1716_v11 }
 0x5c2   : > { %v1719_v63 = vrot.slane %v1718_v44, 2 }
 0x5c4   : > { %v1720_v13 = vadd.f32 %v1719_v63, %v1718_v44 }
 0x5c6   : > { %v1721_v4 = vrot.slane %v1720_v13, 1 }
 0x5c8   : > { %v1722_v27 = vadd.f32 %v1721_v4, %v1720_v13 }
 0x5ca   : > { %v1723_v36 = vmul.f32 0.03125, %v1722_v27 }
 0x5cc   : > { %v1724_v1 = vmul.f32 %v1723_v36, %v1577_v32 }
 0x5ce   : > { %1834 = vmatmul.mubr.f32.vlgmr.msra.gmra.mrb[10].mxu0 %v1724_v1 }
 0x5cf   : > { %3557 = vmatpush3.bf16.msra.mxu0 %v4682_v24  ;;  %3268 = vmatprep.mubr.msk.f32.mxu0 %vm4081_vm0, %v5069_v46  ;;  %v1872_v24 = vld [vmem:[#allocation11 + $0xf0] sm:$0xff] }
 0x5d0   : > { %3558 = vmatprep.subr.bf16.mxu0 %v5063_v56 }
 0x5d3   : > { %3560 = vmatpush3.bf16.msra.mxu0 %v4686_v2  ;;  %v1873_v2 = vld [vmem:[#allocation11 + $0xf8] sm:$0xff] }
 0x5d4   : > { %3561 = vmatprep.subr.bf16.mxu0 %v5063_v56 }
 0x5d7   : > { %3563 = vmatpush3.bf16.msra.mxu0 %v4690_v35  ;;  %v4862_v35 = vpack.c.bf16 %v1873_v2, %v1872_v24 }
 0x5d8   : > { %3564 = vmatprep.subr.bf16.mxu0 %v5063_v56 }
 0x5d9   : > { %3552 = vmatprep.subr.bf16.mxu1 %v4862_v35 }
 0x5db   : > { %3566 = vmatpush3.bf16.msra.mxu0 %v4694_v52  ;;  %v1856_v52 = vld [vmem:[#allocation11 + $0x70] sm:$0xff] }
 0x5dc   : > { %3567 = vmatprep.subr.bf16.mxu0 %v5063_v56 }
 0x5df   : > { %3569 = vmatpush3.bf16.msra.mxu0 %v4697_v61  ;;  %v1857_v61 = vld [vmem:[#allocation11 + $0x78] sm:$0xff] }
 0x5e0   : > { %3570 = vmatprep.subr.bf16.mxu0 %v5063_v56  ;;  %v4864_v16 = vpack.c.bf16 %v1857_v61, %v1856_v52 }
 0x5e2   : > { %3554 = vmatpush3.bf16.msra.mxu1 %v4864_v16 }
 0x5e3   : > { %3572 = vmatpush3.bf16.msra.mxu0 %v4701_v19  ;;  %v3777_v19 = vld [vmem:[#allocation8] sm:$0xff]  }
 0x5e4   : > { %3573 = vmatprep.subr.bf16.mxu0 %v5063_v56  ;;  %3271 = vmatprep.subr.bf16.mxu1 %v3777_v19 }
 0x5e7   : > { %3575 = vmatpush3.bf16.msra.mxu0 %v4705_v33  ;;  %v2724_v33 = vld [vmem:[%s4409_s22 + $0x3] sm:$0x1]  ;;  %s4083_s22 = smov [#allocation13]  }
 0x5e8   : > { %3576 = vmatprep.subr.bf16.mxu0 %v5063_v56  ;;  %v1757_v56 = vld [vmem:[%s5004_s7] sm:$0x3]  ;;  %s3987_s2 = sshll.u32 %s4083_s22, 4  ;;  %s3988_s2 = int_to_ptr.vmem [resolvable:$false] %s3987_s2 }
 0x5e9   : > { %p3990_p3 = scmp.lt.s32.totalorder %s4951_s0, %s3988_s2 }
 0x5eb   : > { %3578 = vmatpush3.bf16.msra.mxu0 %v4709_v15  ;;  %v1762_v15 = vrot.slane %v1757_v56, %v4626_v42 }
 0x5ec   : > { %3580 = vmatprep.subr.bf16.mxu0 %v4728_v31  ;;  %v1766_v31 = vrot.slane %v1757_v56, %v4631_v48 }
 0x5ee   : > { %3269 = vmatmul.mubr.f32.vlgmr.msra.gmra.mrb[12].mxu0 %v2724_v33 }
 0x5ef   : > { %3582 = vmatpush1.bf16.msra.mxu0 %v4730_v38  ;;  %2335 = vmatprep.mubr.f32.mxu0 %v5069_v46 }
 0x5f0   : > { %3584 = vmatprep.subr.bf16.mxu0 %v4734_v51 }
 0x5f3   : > { %3586 = vmatpush1.bf16.msra.mxu0 %v4736_v60 }
 0x5f4   : > { %3588 = vmatprep.subr.bf16.mxu0 %v4740_v12  ;;  %v4891_v12 = vld [vmem:[%s4419_s20 + $0x30] sm:$0xff]  }
 0x5f7   : > { %3590 = vmatpush1.bf16.msra.mxu0 %v4742_v28 }
 0x5f8   : > { %3592 = vmatprep.subr.bf16.mxu0 %v4746_v5 }
 0x5fb   : > { %3594 = vmatpush1.bf16.msra.mxu0 %v4748_v50 }
 0x5fc   : > { %3596 = vmatprep.subr.bf16.mxu0 %v4752_v9  ;;  %v3778_v9 = vld [vmem:[#allocation8 + $0x8] sm:$0xff]  }
 0x5ff   : > { %3598 = vmatpush1.bf16.msra.mxu0 %v4754_v40  ;;  %v3779_v40 = vld [vmem:[#allocation8 + $0x10] sm:$0xff]  }
 0x600   : > { %3600 = vmatprep.subr.bf16.mxu0 %v4758_v23  ;;  %v3780_v23 = vld [vmem:[#allocation8 + $0x18] sm:$0xff]  }
 0x603   : > { %3602 = vmatpush1.bf16.msra.mxu0 %v4760_v29  ;;  %v3781_v29 = vld [vmem:[#allocation8 + $0x20] sm:$0xff]  }
 0x604   : > { %3604 = vmatprep.subr.bf16.mxu0 %v4764_v47  ;;  %v3782_v47 = vld [vmem:[#allocation8 + $0x28] sm:$0xff]  }
 0x607   : > { %3606 = vmatpush1.bf16.msra.mxu0 %v4768_v53  ;;  %v3784_v53 = vld [vmem:[#allocation8 + $0x38] sm:$0xff]  }
 0x608   : > { %3608 = vmatprep.subr.bf16.mxu0 %v4772_v8  ;;  %v4895_v8 = vld [vmem:[%s4419_s20 + $0x38] sm:$0xff]   ;;  %s3989_s20 = scalar_lea.vmem %s3988_s2, 2048 }
 0x609   : > { %v2457_v6 = vunpack.c.h.bf16 %v4895_v8  ;;  %p3991_p5 = scmp.lt.s32.totalorder %s3989_s20, %s3983_s11 }
 0x60b   : > { %3610 = vmatpush1.bf16.msra.mxu0 %v4774_v26  ;;  %v5070_v26 = vld [vmem:[#allocation24_spill] sm:$0xff]  ;;  %p3992_p9 = por %p3991_p5, %p3990_p3 }
 0x60d   : > { %p3993_p8 = pnand %p3992_p9, %p3986_p6 }
 0x6a1   : > { %v1835_v38 = vpop.f32.mrb[10].mxu0 }
 0x6a2   : > { %v1836_v51 = vadd.f32 %v1835_v38, %v1762_v15  ;;  %v1837_v60 = vpop.f32.mrb[11].mxu0 }
 0x6a3   : > { %v1838_v28 = vadd.f32 %v1837_v60, %v1766_v31  ;;  %v2008_v31 = vld [vmem:[%s5000_s3] sm:$0x1] }
 0x6a4   : > { %v1840_v50 = vmax.f32 %v1836_v51, 0.0 }
 0x6a5   : > { %v1841_v5 = vmax.f32 %v1838_v28, 0.0 }
 0x6a7   : > { %1939 = vmatprep.mubr.f32.mxu1 %v1841_v5 }
 0x6a8   : > { %1940 = vmatmul.mubr.f32.vlgmr.msra.gmra.mrb[16].mxu1 %v1840_v50 }
 0x6a9   : > { %3272 = vmatpush3.bf16.msra.mxu1 %v3777_v19  ;;  %3287 = vmatprep.mubr.bf16.mxu1 %v4891_v12 }
 0x6aa   : > { %3273 = vmatprep.subr.bf16.mxu1 %v3778_v9 }
 0x6ad   : > { %3274 = vmatpush3.bf16.msra.mxu1 %v3778_v9 }
 0x6ae   : > { %3275 = vmatprep.subr.bf16.mxu1 %v3779_v40 }
 0x6b1   : > { %3276 = vmatpush3.bf16.msra.mxu1 %v3779_v40  ;;  %v2259_v40 = vld [vmem:[%s5004_s7] sm:$0x3] }
 0x6b2   : > { %3277 = vmatprep.subr.bf16.mxu1 %v3780_v23 }
 0x6b5   : > { %3278 = vmatpush3.bf16.msra.mxu1 %v3780_v23  ;;  %v2264_v23 = vrot.slane %v2259_v40, %v4626_v42 }
 0x6b6   : > { %3279 = vmatprep.subr.bf16.mxu1 %v3781_v29 }
 0x6b9   : > { %3280 = vmatpush3.bf16.msra.mxu1 %v3781_v29  ;;  %v2268_v29 = vrot.slane %v2259_v40, %v4631_v48 }
 0x6ba   : > { %3281 = vmatprep.subr.bf16.mxu1 %v3782_v47 }
 0x6bd   : > { %3282 = vmatpush3.bf16.msra.mxu1 %v3782_v47 }
 0x6be   : > { %3283 = vmatprep.subr.bf16.mxu1 %v3783_v55 }
 0x6c1   : > { %3284 = vmatpush3.bf16.msra.mxu1 %v3783_v55 }
 0x6c2   : > { %3285 = vmatprep.subr.bf16.mxu1 %v3784_v53 }
 0x6c5   : > { %3286 = vmatpush3.bf16.msra.mxu1 %v3784_v53 }
 0x6c6   : > { %3612 = vmatprep.subr.bf16.mxu1 %v4779_v45  ;;  %v5071_v45 = vld [vmem:[#allocation25_spill] sm:$0xff] }
 0x6c8   : > { %3288 = vmatmul.mubr.bf16.vlgmr.msra.gmra.mrb[20].mxu1 %v4895_v8 }
 0x6c9   : > { %3614 = vmatpush3.bf16.msra.mxu1 %v4781_v7  ;;  %v5072_v7 = vld [vmem:[#allocation26_spill] sm:$0xff] }
 0x6ca   : > { %3616 = vmatprep.subr.bf16.mxu1 %v4783_v17  ;;  %v2075_v17 = vpop.f32.mrb[12].mxu0 }
 0x6cb   : > { %v2076_v51 = vadd.f32 %v2075_v17, %v2008_v31 }
 0x6cd   : > { %3618 = vmatpush3.bf16.msra.mxu1 %v4787_v43  ;;  %v3270_v43 = vpop.f32.mrb[13].mxu0  ;;  %v2079_v5 = vmax.f32 %v2076_v51, 0.0 }
 0x6ce   : > { %3620 = vmatprep.subr.bf16.mxu1 %v4790_v59  ;;  %v2376_v43 = vld [vmem:[%s5006_s9] sm:$0x1] }
 0x6d1   : > { %3622 = vmatpush3.bf16.msra.mxu1 %v4793_v18  ;;  %v1874_v18 = vld [vmem:[%s5006_s9] sm:$0x1] }
 0x6d2   : > { %3624 = vmatprep.subr.bf16.mxu1 %v4796_v25 }
 0x6d5   : > { %3626 = vmatpush3.bf16.msra.mxu1 %v4799_v14 }
 0x6d6   : > { %3628 = vmatprep.subr.bf16.mxu1 %v4802_v30 }
 0x6d9   : > { %3630 = vmatpush3.bf16.msra.mxu1 %v4805_v34 }
 0x6da   : > { %3632 = vmatprep.subr.bf16.mxu1 %v4808_v37 }
 0x6dd   : > { %3634 = vmatpush3.bf16.msra.mxu1 %v5070_v26 }
 0x6de   : > { %3636 = vmatprep.subr.bf16.mxu1 %v5071_v45 }
 0x6e1   : > { %3638 = vmatpush3.bf16.msra.mxu1 %v5072_v7 }
 0x6e2   : > { %3640 = vmatprep.subr.bf16.mxu1 %v4862_v35 }
 0x6e5   : > { %3642 = vmatpush3.bf16.msra.mxu1 %v4864_v16 }
 0x77b   : > { %v3006_v59 = vpop.f32.mrb[16].mxu1 }
 0x77c   : > { %v3007_v25 = vpop.f32.mrb[17].mxu1 }
 0x77d   : > { %v3008_v14 = vadd.f32 %v3007_v25, %v3006_v59 }
 0x77f   : > { %v1942_v30 = vadd.f32 %v3008_v14, %v1874_v18 }
 0x781   : > { %v2715_v34 = vmul.f32 -1.442695, %v1942_v30 }
 0x783   : > { %3803 = vpow2.f32 %v2715_v34 }
 0x78d   : > { %v3804_v37 = vpop.eup %3803 }
 0x78e   : > { %v1948_v20 = vadd.f32 1.0, %v3804_v37  ;;  %v2454_v37 = vunpack.c.l.bf16 %v4891_v12 }
 0x790   : > { %3805 = vrcp.f32 %v1948_v20  ;;  %v2455_v20 = vunpack.c.h.bf16 %v4891_v12 }
 0x79a   : > { %v3806_v62 = vpop.eup %3805 }
 0x79b   : > { %v1951_v57 = vadd.f32 1.0, %v3806_v62  ;;  %v3289_v41 = vpop.f32.mrb[20].mxu1  ;;  %v2456_v62 = vunpack.c.l.bf16 %v4895_v8 }
 0x79c   : > { %v2197_v11 = vpop.f32.mrb[21].mxu1  ;;  %v2206_v27 = vadd.f32 %v3289_v41, %v4831_v3 }
 0x79d   : > { %v1959_v22 = vrot.slane %v1951_v57, %v4626_v42  ;;  %v3290_v44 = vpop.f32.mrb[22].mxu1  ;;  %v2198_v54 = vadd.f32 %v4831_v3, %v2197_v11 }
 0x79e   : > { %v2200_v63 = vpop.f32.mrb[23].mxu1  ;;  %v2209_v2 = vadd.f32 %v3290_v44, %v4831_v3  ;;  %v2214_v52 = vmax.f32 %v2206_v27, 0.0 }
 0x79f   : > { %v1960_v21 = vmul.f32 %v1959_v22, %v1952_v39  ;;  %v1961_v13 = vmul.f32 %v1959_v22, %v1953_v10  ;;  %v1962_v4 = vmul.f32 %v1959_v22, %v1954_v58  ;;  %v1963_v32 = vmul.f32 %v1959_v22, %v1955_v0 }
 0x7a0   : > { %v2201_v36 = vadd.f32 %v4831_v3, %v2200_v63  ;;  %v2212_v24 = vmax.f32 %v2198_v54, 0.0  ;;  %v2215_v16 = vmax.f32 %v2209_v2, 0.0 }
 0x7a1   : > { %v2799_v1 = vpack.c.bf16 %v1961_v13, %v1960_v21  ;;  %v2804_v46 = vpack.c.bf16 %v1963_v32, %v1962_v4 }
 0x7a2   : > { %v2213_v35 = vmax.f32 %v2201_v36, 0.0 }
 0x7a3   : > { %2819 = vst [vmem:[%s4673_s27 + $0x20] sm:$0xff] %v2799_v1   ;;  %2820 = vst [vmem:[%s4673_s27 + $0x28] sm:$0xff] %v2804_v46  }
 0x7a4   : > { %v2216_v61 = vadd.f32 %v2213_v35, %v2212_v24 }
 0x7a6   : > { %v2217_v19 = vadd.f32 %v2216_v61, %v2214_v52 }
 0x7a8   : > { %v2218_v33 = vadd.f32 %v2217_v19, %v2215_v16 }
 0x7aa   : > { %v2219_v56 = vrot.slane %v2218_v33, 4 }
 0x7ac   : > { %v2220_v15 = vadd.f32 %v2219_v56, %v2218_v33 }
 0x7ae   : > { %v2221_v38 = vrot.slane %v2220_v15, 2 }
 0x7b0   : > { %v2222_v60 = vadd.f32 %v2221_v38, %v2220_v15 }
 0x7b2   : > { %v2223_v28 = vrot.slane %v2222_v60, 1 }
 0x7b4   : > { %v2224_v3 = vadd.f32 %v2223_v28, %v2222_v60 }
 0x7b6   : > { %v2225_v50 = vmul.f32 0.03125, %v2224_v3 }
 0x7b8   : > { %v2226_v9 = vmul.f32 %v2225_v50, %v2079_v5 }
 0x7ba   : > { %2336 = vmatmul.mubr.f32.vlgmr.msra.gmra.mrb[14].mxu0 %v2226_v9 }
 0x88d   : > { %v2337_v47 = vpop.f32.mrb[14].mxu0 }
 0x88e   : > { %v2338_v55 = vadd.f32 %v2337_v47, %v2264_v23  ;;  %v2339_v53 = vpop.f32.mrb[15].mxu0 }
 0x88f   : > { %v2340_v26 = vadd.f32 %v2339_v53, %v2268_v29 }
 0x890   : > { %v2342_v7 = vmax.f32 %v2338_v55, 0.0 }
 0x891   : > { %v2343_v45 = vmax.f32 %v2340_v26, 0.0 }
 0x893   : > { %2441 = vmatprep.mubr.f32.mxu1 %v2343_v45 }
 0x894   : > { %2442 = vmatmul.mubr.f32.vlgmr.msra.gmra.mrb[18].mxu1 %v2342_v7 }
 0x967   : > { %v3068_v17 = vpop.f32.mrb[18].mxu1 }
 0x968   : > { %v3069_v59 = vpop.f32.mrb[19].mxu1 }
 0x969   : > { %v3070_v18 = vadd.f32 %v3069_v59, %v3068_v17 }
 0x96b   : > { %v2444_v25 = vadd.f32 %v3070_v18, %v2376_v43 }
 0x96d   : > { %v2740_v14 = vmul.f32 -1.442695, %v2444_v25 }
 0x96f   : > { %3807 = vpow2.f32 %v2740_v14 }
 0x979   : > { %v3808_v48 = vpop.eup %3807 }
 0x97a   : > { %v2450_v30 = vadd.f32 1.0, %v3808_v48 }
 0x97c   : > { %3809 = vrcp.f32 %v2450_v30 }
 0x986   : > { %v3810_v34 = vpop.eup %3809 }
 0x987   : > { %v2453_v39 = vadd.f32 1.0, %v3810_v34 }
 0x989   : > { %v2461_v10 = vrot.slane %v2453_v39, %v4626_v42 }
 0x98b   : > { %v2462_v49 = vmul.f32 %v2461_v10, %v2454_v37  ;;  %v2463_v58 = vmul.f32 %v2461_v10, %v2455_v20  ;;  %v2464_v0 = vmul.f32 %v2461_v10, %v2456_v62  ;;  %v2465_v57 = vmul.f32 %v2461_v10, %v2457_v6 }
 0x98d   : > { %v2809_v12 = vpack.c.bf16 %v2463_v58, %v2462_v49  ;;  %v2814_v8 = vpack.c.bf16 %v2465_v57, %v2464_v0 }
 0x98f   : > { %2821 = vst [vmem:[%s4673_s27 + $0x30] sm:$0xff] %v2809_v12   ;;  %2822 = vst [vmem:[%s4673_s27 + $0x38] sm:$0xff] %v2814_v8  }
 0x990   : > { %3996 = shalt.err (!%p3993_p8)
}
 0x991   : > { %s3997_s27 = scalar_lea.hbm %s4949_s25, 1024  ;;  %s4001_s28 = scalar_lea.hbm %s5075_s19, 2048 }
 0x992   : > { %p3998_p11 = scmp.ne.s32.totalorder %s4949_s25, %s3997_s27  ;;  %p4002_p1 = scmp.lt.u32.totalorder %s4949_s25, %s5075_s19 }
 0x993   : > { %p4003_p2 = scmp.lt.u32.totalorder %s4001_s28, %s3997_s27  ;;  %p4005_p0 = scmp.lt.u32.totalorder %s3997_s27, %s4949_s25 }
 0x994   : > { %p3999_p7 = pnand %p3998_p11, %p4307_p10 }
 0x995   : > { %p4004_p13 = por %p4003_p2, %p4002_p1 }
 0x996   : > { %p4000_p12 = pneg %p3999_p7 }
 0x997   : > { %p4006_p4 = por %p4005_p0, %p4004_p13 }
 0x999   : > { %p4007_p6 = pnand %p4006_p4, %p4000_p12 }
 0x99b   : > { %4010 = shalt.err (!%p4007_p6)
}
 0x99c   : > { %s4084_s10 = smov 64   ;;  %s4085_s26 = smov 4  }
 0x99d   : > { %3663 = dma.vmem_to_hbm [thread:$0]  (%p4307_p10), %s4951_s0, 1024, %s4949_s25, %s2488_s17, %s4084_s10, %s4084_s10, %s4085_s26  }
 0x99e PF: > { %s5076_s13 = sld [smem:[#allocation20_spill]]  ;;  %s5077_s6 = sld [smem:[#allocation21_spill]] }
 0x99f   : > { %p5079_p5 = scmp.ge.s32.totalorder %s4065_s16, 2 }
 0x9a4   : > { %s2517_s21 = sand.u32 1, %s5076_s13   ;;  %p5078_p3 = scmp.ne.s32.totalorder %s5077_s6, 0 }
 0x9a5   : > { %s2518_s11 = scalar_lea.sflag [#allocation4], %s2517_s21 }
 0x9a6   : > { %p3686_p9 = pnand %p5079_p5, %p5078_p3 }
 0x9a8   : > { %4048 = dma.done.wait (!%p3686_p9), %s2518_s11, 1024  }
 0x9a9   : > { %4050 = vsyncadd (!%p3686_p9), %s2518_s11, 4294966272  ;;  %p28_p8 = scmp.ge.s32.totalorder %s4297_s12, 4   ;;  %s5080_s13 = smov %s4057_s14 }
 0x9aa   : > { %s5081_s14 = smov %s4061_s15  ;;  %s5082_s15 = smov %s4313_s18 }
 0x9ab   : > { %s5083_s16 = smov %s4297_s12  ;;  %30 = sbr.rel (!%p28_p8) target bundleno = 16 (0x10), region = 143 }
 0x9b2   :  { %2523 = vsyncpa [#allocation3], 1 }
 0x9b3   :  { %2525 = vsyncpa [#allocation3 + $0x1], 1 }
 0x9b4   :  { %2526 = vsyncpa [#allocation6], 1 }
 0x9b5   :  { %2528 = vsyncpa [#allocation6 + $0x1], 1 }
 0x9b6   :  { %2529 = vsyncpa [#allocation9], 1 }
 0x9b7   :  { %2530 = vsyncpa [#allocation12], 1 }
 0x9b8   :  { %2531 = vsyncpa [#allocation4], 1 }
 0x9b9   :  { %2533 = vsyncpa [#allocation4 + $0x1], 1 }

</bundles_post_ra>
